<compile_context>
chip_gen: v7x
topology: tpu7x:2x2x1
jax: 0.10.0
libtpu: 0.0.40
codegen_flags: <defaults>
</compile_context>

<pallas_src>
import jax
import jax.numpy as jnp
from jax import lax
from jax.experimental import pallas as pl
from jax.experimental.pallas import tpu as pltpu


# ----------------------------------------------------------------------------
# Kernel
# ----------------------------------------------------------------------------
def _nam_kernel(x_ref, b1_ref, e1_ref, b2_ref, e2_ref, s_ref, sl_ref,
                part_ref, tot_ref):
    # x_ref : (tm, Fp)       batch tile, feature count padded to a multiple of 8
    # b1_ref: (1, Fp)        ExU-1 biases (one scalar per feature)
    # e1_ref: (Fp, F*Hp)     block-diagonal exp(W1)  (precomputed in wrapper)
    # b2_ref: (1, F*Hp)      ExU-2 biases, flattened per-feature blocks
    # e2_ref: (F*Hp, Np)     block-diagonal exp(W2)  (precomputed in wrapper)
    # s_ref : (1, Np)        summation params (padded with zeros to 128 lanes)
    # sl_ref: (1, 1)         final summation bias
    shifted1 = x_ref[...] - b1_ref[...]                                # (tm, Fp)

    # ExU(1, H) for every feature at once: block-diagonal exp(W1) as [K, N] RHS.
    h = jnp.maximum(
        jnp.dot(shifted1, e1_ref[...], preferred_element_type=jnp.float32),
        0.0)                                                           # (tm, F*Hp)

    # torch.nn.Dropout(p=0.025): identity in eval mode.
    # TODO(synk): training-mode dropout would need a pltpu.prng_* mask here.

    # ExU(H, 1) for every feature at once: block-diagonal exp(W2) as [K, N] RHS.
    shifted2 = h - b2_ref[...]                                         # (tm, F*Hp)
    z = jnp.dot(shifted2, e2_ref[...], preferred_element_type=jnp.float32)  # (tm, Np)

    part = s_ref[...] * jnp.maximum(z, 0.0)                            # (tm, Np)
    part_ref[...] = part.astype(part_ref.dtype)
    tot_ref[...] = (jnp.sum(part, axis=-1, keepdims=True)
                    + sl_ref[...]).astype(tot_ref.dtype)               # (tm, 1)


# ----------------------------------------------------------------------------
# Parameter init / packing
# ----------------------------------------------------------------------------
def init_nam_params(key, in_dim, feature_hidden_dim):
    """Mirrors ExU.reset_parameters / NAM.__init__ initialisation."""
    feat_params, summation = [], []
    for i in range(in_dim):
        H = feature_hidden_dim[i]
        key, k1, k2, k3, k4 = jax.random.split(key, 5)
        feat_params.append(dict(
            w1=3.5 + 0.5 * jax.random.normal(k1, (H, 1), jnp.float32),  # ExU(1, H).weight
            b1=3.5 + 0.5 * jax.random.normal(k2, (1,), jnp.float32),    # ExU(1, H).bias
            w2=3.5 + 0.5 * jax.random.normal(k3, (1, H), jnp.float32),  # ExU(H, 1).weight
            b2=3.5 + 0.5 * jax.random.normal(k4, (H,), jnp.float32),    # ExU(H, 1).bias
        ))
    for _ in range(in_dim + 1):
        key, ks = jax.random.split(key)
        summation.append(0.5 + 0.5 * jax.random.normal(ks, (1,), jnp.float32))
    return feat_params, summation


def pack_nam_params(feat_params, summation, *, lane=128):
    """One-time packing: exp() hoisted out of the kernel, block-diagonal [K,N]
    layout, hidden widths padded to a lane multiple, output width padded to 128."""
    F = len(feat_params)
    Fp = max(8, ((F + 7) // 8) * 8)                       # sublane-aligned feature count
    Hmax = max(p["w1"].shape[0] for p in feat_params)
    Hp = ((Hmax + lane - 1) // lane) * lane               # lane-aligned hidden width
    Np = max(lane, ((F + lane - 1) // lane) * lane)       # lane-dense output width

    b1 = jnp.zeros((1, Fp), jnp.float32)
    e1 = jnp.zeros((Fp, F * Hp), jnp.float32)
    b2 = jnp.zeros((1, F * Hp), jnp.float32)
    e2 = jnp.zeros((F * Hp, Np), jnp.float32)
    s = jnp.zeros((1, Np), jnp.float32)
    for f, p in enumerate(feat_params):
        H = p["w1"].shape[0]
        c0 = f * Hp
        b1 = b1.at[0, f].set(p["b1"][0])
        e1 = e1.at[f, c0:c0 + H].set(jnp.exp(p["w1"][:, 0]))   # exp precomputed once
        b2 = b2.at[0, c0:c0 + H].set(p["b2"])
        e2 = e2.at[c0:c0 + H, f].set(jnp.exp(p["w2"][0, :]))   # exp precomputed once
        s = s.at[0, f].set(summation[f][0])
    s_last = summation[F].reshape(1, 1)
    return dict(b1=b1, e1=e1, b2=b2, e2=e2, s=s, s_last=s_last, F=F, Fp=Fp)


# ----------------------------------------------------------------------------
# Wrapper
# ----------------------------------------------------------------------------
def nam_forward(x, packed, *, tm=None):
    """x: [batch, in_dim] float32 -> (total [batch], partial [batch, in_dim])."""
    batch, F = x.shape
    assert F == packed["F"], "feature count mismatch"
    Fp = packed["b1"].shape[1]
    FH = packed["e1"].shape[1]
    Np = packed["s"].shape[1]

    x_pad = jnp.pad(x, ((0, 0), (0, Fp - F))) if Fp != F else x

    if tm is None:
        # Largest multiple-of-8 batch tile <= 256 dividing batch, with >= 2 grid
        # steps when possible (pipelining + both v7x TensorCores).
        candidates = [t for t in range(8, min(batch, 256) + 1, 8) if batch % t == 0]
        tm = candidates[-1] if candidates else batch
        if candidates and batch // tm < 2 and len(candidates) > 1:
            tm = candidates[-2]
    assert batch % tm == 0

    grid = (batch // tm,)

    partial_pad, total = pl.pallas_call(
        _nam_kernel,
        out_shape=(jax.ShapeDtypeStruct((batch, Np), x.dtype),
                   jax.ShapeDtypeStruct((batch, 1), x.dtype)),
        grid_spec=pltpu.PrefetchScalarGridSpec(
            num_scalar_prefetch=0,
            grid=grid,
            in_specs=[
                pl.BlockSpec((tm, Fp), lambda i: (i, 0)),    # x tile (streams)
                pl.BlockSpec((1, Fp), lambda i: (0, 0)),     # b1 (grid-invariant)
                pl.BlockSpec((Fp, FH), lambda i: (0, 0)),    # exp(W1) block-diag
                pl.BlockSpec((1, FH), lambda i: (0, 0)),     # b2
                pl.BlockSpec((FH, Np), lambda i: (0, 0)),    # exp(W2) block-diag
                pl.BlockSpec((1, Np), lambda i: (0, 0)),     # summation params
                pl.BlockSpec((1, 1), lambda i: (0, 0)),      # final summation bias
            ],
            out_specs=(
                pl.BlockSpec((tm, Np), lambda i: (i, 0)),    # partial (lane-dense)
                pl.BlockSpec((tm, 1), lambda i: (i, 0)),     # per-row sum
            ),
        ),
        compiler_params=pltpu.CompilerParams(
            dimension_semantics=("parallel",),
            vmem_limit_bytes=32 * 1024 * 1024,
        ),
    )(x_pad, packed["b1"], packed["e1"], packed["b2"], packed["e2"],
      packed["s"], packed["s_last"])

    return total[:, 0], partial_pad[:, :F]


# ----------------------------------------------------------------------------
# Pure-JAX reference (literal transcription of the PyTorch forward, eval mode)
# ----------------------------------------------------------------------------
def _exu_ref(inp, weight, bias):
    # PyTorch full-f32 matmul numerics (TPU default precision would truncate to bf16).
    return jax.nn.relu(jnp.matmul(inp - bias, jnp.exp(weight.T),
                                  precision=lax.Precision.HIGHEST))


def nam_reference(x, feat_params, summation):
    in_dim = len(feat_params)
    cols = []
    for i, p in enumerate(feat_params):
        h = _exu_ref(x[:, i].reshape(-1, 1), p["w1"], p["b1"])  # ExU(1, H_i)
        # Dropout: identity at inference.
        y = _exu_ref(h, p["w2"], p["b2"])                       # ExU(H_i, 1)
        cols.append(summation[i] * y)
    partial = jnp.concatenate(cols, axis=1)
    total = partial.sum(axis=1) + summation[in_dim]
    return total, partial


# ----------------------------------------------------------------------------
if __name__ == "__main__":
    key = jax.random.PRNGKey(0)

    in_dim = 6                                     # number of NAM features
    feature_hidden_dim = [100, 64, 128, 37, 90, 128]
    batch = 512

    key, kp, kx = jax.random.split(key, 3)
    feat_params, summation = init_nam_params(kp, in_dim, feature_hidden_dim)
    packed = pack_nam_params(feat_params, summation)

    # Inputs in a range where ExU units actually activate (params ~ N(3.5, 0.5)).
    x = jax.random.uniform(kx, (batch, in_dim), jnp.float32, minval=0.0, maxval=8.0)

    total, partial = nam_forward(x, packed)
    total = jax.block_until_ready(total)
    partial = jax.block_until_ready(partial)

    ref_total, ref_partial = nam_reference(x, feat_params, summation)

    assert total.shape == (batch,)
    assert partial.shape == (batch, in_dim)
    assert jnp.allclose(partial, ref_partial, rtol=1e-3, atol=1e-1), "partial mismatch"
    assert jnp.allclose(total, ref_total, rtol=1e-3, atol=1e-1), "total mismatch"

    print("KERNEL_OK")
</pallas_src>

<mosaic_0001>
module attributes {stable_mosaic.version = 11 : i64} {
  func.func @_nam_kernel(%arg0: i32, %arg1: memref<256x8xf32, #tpu.memory_space<vmem>>, %arg2: memref<1x8xf32, #tpu.memory_space<vmem>>, %arg3: memref<8x768xf32, #tpu.memory_space<vmem>>, %arg4: memref<1x768xf32, #tpu.memory_space<vmem>>, %arg5: memref<768x128xf32, #tpu.memory_space<vmem>>, %arg6: memref<1x128xf32, #tpu.memory_space<vmem>>, %arg7: memref<1x1xf32, #tpu.memory_space<vmem>>, %arg8: memref<256x128xf32, #tpu.memory_space<vmem>>, %arg9: memref<256x1xf32, #tpu.memory_space<vmem>>) attributes {dimension_semantics = [#tpu.dimension_semantics<parallel>], iteration_bounds = array<i64: 2>, scalar_prefetch = 0 : i64, scratch_operands = 0 : i64, tpu.core_type = #tpu.core_type<tc>, window_params = [{transform_indices = @transform_0, window_bounds = array<i64: 256, 8>}, {pipeline_mode = #tpu.pipeline_mode<synchronous>, transform_indices = @transform_1, window_bounds = array<i64: 1, 8>}, {pipeline_mode = #tpu.pipeline_mode<synchronous>, transform_indices = @transform_2, window_bounds = array<i64: 8, 768>}, {pipeline_mode = #tpu.pipeline_mode<synchronous>, transform_indices = @transform_3, window_bounds = array<i64: 1, 768>}, {pipeline_mode = #tpu.pipeline_mode<synchronous>, transform_indices = @transform_4, window_bounds = array<i64: 768, 128>}, {pipeline_mode = #tpu.pipeline_mode<synchronous>, transform_indices = @transform_5, window_bounds = array<i64: 1, 128>}, {pipeline_mode = #tpu.pipeline_mode<synchronous>, transform_indices = @transform_6, window_bounds = array<i64: 1, 1>}, {transform_indices = @transform_7, window_bounds = array<i64: 256, 128>}, {transform_indices = @transform_8, window_bounds = array<i64: 256, 1>}]} {
    %c0 = arith.constant 0 : index
    %c0_0 = arith.constant 0 : index
    %0 = vector.load %arg1[%c0, %c0_0] : memref<256x8xf32, #tpu.memory_space<vmem>>, vector<256x8xf32>
    %c0_1 = arith.constant 0 : index
    %c0_2 = arith.constant 0 : index
    %1 = vector.load %arg2[%c0_1, %c0_2] : memref<1x8xf32, #tpu.memory_space<vmem>>, vector<1x8xf32>
    %2 = vector.broadcast %1 : vector<1x8xf32> to vector<256x8xf32>
    %3 = arith.subf %0, %2 : vector<256x8xf32>
    %c0_3 = arith.constant 0 : index
    %c0_4 = arith.constant 0 : index
    %4 = vector.load %arg3[%c0_3, %c0_4] : memref<8x768xf32, #tpu.memory_space<vmem>>, vector<8x768xf32>
    %cst = arith.constant dense<0.000000e+00> : vector<256x768xf32>
    %5 = tpu.matmul %3, %4, %cst {dimension_numbers = #tpu.dot_dimension_numbers<[1], [0], [0], [1], [0, 0, 1, 1], [], []>} : vector<256x8xf32>, vector<8x768xf32>, vector<256x768xf32> -> vector<256x768xf32>
    %cst_5 = arith.constant 0.000000e+00 : f32
    %6 = vector.broadcast %cst_5 : f32 to vector<256x768xf32>
    %7 = arith.maximumf %5, %6 : vector<256x768xf32>
    %c0_6 = arith.constant 0 : index
    %c0_7 = arith.constant 0 : index
    %8 = vector.load %arg4[%c0_6, %c0_7] : memref<1x768xf32, #tpu.memory_space<vmem>>, vector<1x768xf32>
    %9 = vector.broadcast %8 : vector<1x768xf32> to vector<256x768xf32>
    %10 = arith.subf %7, %9 : vector<256x768xf32>
    %c0_8 = arith.constant 0 : index
    %c0_9 = arith.constant 0 : index
    %11 = vector.load %arg5[%c0_8, %c0_9] : memref<768x128xf32, #tpu.memory_space<vmem>>, vector<768x128xf32>
    %cst_10 = arith.constant dense<0.000000e+00> : vector<256x128xf32>
    %12 = tpu.matmul %10, %11, %cst_10 {dimension_numbers = #tpu.dot_dimension_numbers<[1], [0], [0], [1], [0, 0, 1, 1], [], []>} : vector<256x768xf32>, vector<768x128xf32>, vector<256x128xf32> -> vector<256x128xf32>
    %c0_11 = arith.constant 0 : index
    %c0_12 = arith.constant 0 : index
    %13 = vector.load %arg6[%c0_11, %c0_12] : memref<1x128xf32, #tpu.memory_space<vmem>>, vector<1x128xf32>
    %cst_13 = arith.constant 0.000000e+00 : f32
    %14 = vector.broadcast %cst_13 : f32 to vector<256x128xf32>
    %15 = arith.maximumf %12, %14 : vector<256x128xf32>
    %16 = vector.broadcast %13 : vector<1x128xf32> to vector<256x128xf32>
    %17 = arith.mulf %16, %15 : vector<256x128xf32>
    %c0_14 = arith.constant 0 : index
    %c0_15 = arith.constant 0 : index
    %18 = vector.load %arg8[%c0_14, %c0_15] : memref<256x128xf32, #tpu.memory_space<vmem>>, vector<256x128xf32>
    tpu.vector_store %arg8[%c0_14, %c0_15], %17 {strides = array<i32>} : memref<256x128xf32, #tpu.memory_space<vmem>>, vector<256x128xf32>,
    %cst_16 = arith.constant dense<0.000000e+00> : vector<256xf32>
    %19 = vector.multi_reduction <add>, %17, %cst_16 [1] : vector<256x128xf32> to vector<256xf32>
    %20 = vector.shape_cast %19 : vector<256xf32> to vector<256x1xf32>
    %c0_17 = arith.constant 0 : index
    %c0_18 = arith.constant 0 : index
    %21 = vector.load %arg7[%c0_17, %c0_18] : memref<1x1xf32, #tpu.memory_space<vmem>>, vector<1x1xf32>
    %22 = vector.broadcast %21 : vector<1x1xf32> to vector<256x1xf32>
    %23 = arith.addf %20, %22 : vector<256x1xf32>
    %c0_19 = arith.constant 0 : index
    %c0_20 = arith.constant 0 : index
    %24 = vector.load %arg9[%c0_19, %c0_20] : memref<256x1xf32, #tpu.memory_space<vmem>>, vector<256x1xf32>
    tpu.vector_store %arg9[%c0_19, %c0_20], %23 {strides = array<i32>} : memref<256x1xf32, #tpu.memory_space<vmem>>, vector<256x1xf32>,
    return
  }
  func.func @transform_0(%arg0: i32) -> (i32, i32) {
    %c0_i32 = arith.constant 0 : i32
    %c0_i32_0 = arith.constant 0 : i32
    return %arg0, %c0_i32 : i32, i32
  }
  func.func @transform_1(%arg0: i32) -> (i32, i32) {
    %c0_i32 = arith.constant 0 : i32
    %c0_i32_0 = arith.constant 0 : i32
    %c0_i32_1 = arith.constant 0 : i32
    return %c0_i32, %c0_i32_0 : i32, i32
  }
  func.func @transform_2(%arg0: i32) -> (i32, i32) {
    %c0_i32 = arith.constant 0 : i32
    %c0_i32_0 = arith.constant 0 : i32
    %c0_i32_1 = arith.constant 0 : i32
    return %c0_i32, %c0_i32_0 : i32, i32
  }
  func.func @transform_3(%arg0: i32) -> (i32, i32) {
    %c0_i32 = arith.constant 0 : i32
    %c0_i32_0 = arith.constant 0 : i32
    %c0_i32_1 = arith.constant 0 : i32
    return %c0_i32, %c0_i32_0 : i32, i32
  }
  func.func @transform_4(%arg0: i32) -> (i32, i32) {
    %c0_i32 = arith.constant 0 : i32
    %c0_i32_0 = arith.constant 0 : i32
    %c0_i32_1 = arith.constant 0 : i32
    return %c0_i32, %c0_i32_0 : i32, i32
  }
  func.func @transform_5(%arg0: i32) -> (i32, i32) {
    %c0_i32 = arith.constant 0 : i32
    %c0_i32_0 = arith.constant 0 : i32
    %c0_i32_1 = arith.constant 0 : i32
    return %c0_i32, %c0_i32_0 : i32, i32
  }
  func.func @transform_6(%arg0: i32) -> (i32, i32) {
    %c0_i32 = arith.constant 0 : i32
    %c0_i32_0 = arith.constant 0 : i32
    %c0_i32_1 = arith.constant 0 : i32
    return %c0_i32, %c0_i32_0 : i32, i32
  }
  func.func @transform_7(%arg0: i32) -> (i32, i32) {
    %c0_i32 = arith.constant 0 : i32
    %c0_i32_0 = arith.constant 0 : i32
    return %arg0, %c0_i32 : i32, i32
  }
  func.func @transform_8(%arg0: i32) -> (i32, i32) {
    %c0_i32 = arith.constant 0 : i32
    %c0_i32_0 = arith.constant 0 : i32
    return %arg0, %c0_i32 : i32, i32
  }
}

</mosaic_0001>

<bundles_post_ra>
// kernel: tpu_custom_call.1
= control target key start
LH: loop header
LB: loop body
LE: loop exit
PB: predicated region body
PF: predicated region fallthrough
CT: control target
= control target key end

     0   :  { %s4711_s0 = inlined_call_operand.vmem [shape: f32[512,8], index: 0, kind: input, shape index: {}]   ;;  %s4712_s1 = inlined_call_operand.vmem [shape: f32[1,8], index: 1, kind: input, shape index: {}]   ;;  %s4713_s2 = inlined_call_operand.vmem [shape: f32[8,768], index: 2, kind: input, shape index: {}]   ;;  %s4714_s3 = inlined_call_operand.vmem [shape: f32[1,768], index: 3, kind: input, shape index: {}]   ;;  %s4715_s4 = inlined_call_operand.hbm [shape: f32[768,128], index: 4, kind: input, shape index: {}]   ;;  %s4716_s5 = inlined_call_operand.vmem [shape: f32[1,128], index: 5, kind: input, shape index: {}]   ;;  %s4717_s6 = inlined_call_operand.<no memory space> [shape: f32[1,1], index: 6, kind: input, shape index: {}]   ;;  %s4718_s7 = inlined_call_operand.hbm [shape: f32[512,128], index: 7, kind: output, shape index: {0}]   ;;  %s4719_s8 = inlined_call_operand.vmem [shape: f32[512,1], index: 8, kind: output, shape index: {1}]  }
   0x1   :  { %v14_v0 = vstv %s4717_s6 }
   0x2   :  { %15 = vst [vmem:[#allocation2] sm:$0x1] %v14_v0 }
   0x3   :  { %16 = vsyncpa [#allocation4], 0 }
   0x4   :  { %17 = vsyncpa [#allocation5], 0 }
   0x5   :  { %19 = vsyncpa [#allocation5 + $0x1], 0  ;;  %s3396_s29 = smov 0   ;;  %s3398_s30 = smov 0  }
   0x6   :  { %s3400_s9 = smov 0   ;;  %s3402_s10 = smov 0  }
   0x7 LB: > { %s3417_s6 = sadd.s32 4294967295, %s3338_s10   ;;  %s2831_s11 = sadd.s32 4294967294, %s3338_s10   ;;  %s3338_s10 = sphi %s3402_s10, %s4735_s10   ;;  %s3334_s9 = sphi %s3400_s9, %s4734_s9   ;;  %s3330_s30 = sphi %s3398_s30, %s4733_s30   ;;  %s3326_s29 = sphi %s3396_s29, %s4732_s29  }
   0x8   : > { %s3421_s12 = sadd.s32 1, %s3338_s10   ;;  %s184_s13 = sadd.s32 1, %s3334_s9 }
   0x9   : > { %s181_s14 = ssub.s32 %s3338_s10, %s3421_s12  ;;  %p194_p0 = scmp.ne.s32.totalorder %s3334_s9, %s3330_s30 }
   0xa   : > { %p182_p1 = scmp.eq.s32.totalorder %s181_s14, 0  ;;  %p195_p2 = scmp.eq.s32.totalorder %s3417_s6, 1 }
   0xb   : > { %p200_p3 = scmp.ne.s32.totalorder %s3330_s30, %s3326_s29  ;;  %p201_p4 = scmp.eq.s32.totalorder %s2831_s11, 1 }
   0xc   : > { %s3432_s15 = scalar_select %p182_p1, %s3334_s9, %s184_s13  }
   0xd   : > { %p3434_p5 = por %p195_p2, %p194_p0  ;;  %p3438_p6 = por %p201_p4, %p200_p3 }
   0xe   : > { %p2832_p7 = scmp.ge.s32.totalorder %s3338_s10, 1  ;;  %p234_p8 = scmp.lt.s32.totalorder %s3338_s10, 3 }
   0xf   : > { %s4723_s16 = scalar_select %p3434_p5, 1, 0 }
  0x10   : > { %s4724_s17 = scalar_select %p3438_p6, 1, 0 }
  0x11   : > { %p4720_p9 = scmp.eq.s32.totalorder %s3417_s6, 0  ;;  %p3445_p10 = pnand %p2832_p7, %p234_p8 }
  0x12   : > { %s3340_s19 = smov [#allocation3]   ;;  %s3244_s24 = scalar_lea.hbm %s4715_s4, 12288 }
  0x13   : > { %s4725_s18 = scalar_select %p3445_p10, 1, 0 }
  0x14   : > { %s255_s20 = sshll.u32 %s3340_s19, 4  ;;  %p3193_p11 = pneg %p3445_p10  ;;  %s256_s20 = int_to_ptr.vmem [resolvable:$true] %s255_s20 }
  0x15   : > { %p3245_p13 = scmp.ne.s32.totalorder %s4715_s4, %s3244_s24  ;;  %p3251_p3 = scmp.lt.u32.totalorder %s3244_s24, %s4715_s4 }
  0x16   : > { %p3453_p12 = pnand %p4720_p9, %p3193_p11 }
  0x18   : > { %p3246_p0 = pneg %p3453_p12 }
  0x1a   : > { %p3247_p1 = pnand %p3246_p0, %p3245_p13 }
  0x1c   : > { %p3248_p2 = pneg %p3247_p1 }
  0x1e   : > { %p3253_p4 = pnand %p3251_p3, %p3248_p2 }
  0x20   : > { %3256 = shalt.err (!%p3253_p4)
}
  0x21   : > { %s3257_s11 = scalar_lea.vmem %s256_s20, 12288  ;;  %p3265_p9 = scmp.lt.s32.totalorder %s256_s20, %s256_s20 }
  0x22   : > { %p3258_p7 = scmp.ne.s32.totalorder %s256_s20, %s3257_s11  ;;  %p3266_p6 = scmp.lt.s32.totalorder %s3257_s11, %s3257_s11 }
  0x24   : > { %p3260_p8 = pnand %p3258_p7, %p3246_p0  ;;  %p3267_p5 = por %p3266_p6, %p3265_p9 }
  0x26   : > { %p3261_p11 = pneg %p3260_p8 }
  0x28   : > { %p3268_p10 = pnand %p3267_p5, %p3261_p11 }
  0x2a   : > { %3271 = shalt.err (!%p3268_p10)
}
  0x2b   : > { %s3341_s13 = smov 128   ;;  %s3342_s14 = smov 8  }
  0x2c   : > { %3196 = dma.hbm_to_vmem [thread:$0]  (!%p3453_p12), %s4715_s4, 12288, %s256_s20, [#allocation4], %s3341_s13, %s3341_s13, %s3342_s14  }
  0x2d   : > { %p4727_p13 = scmp.ne.s32.totalorder %s4725_s18, 0 }
  0x2e   : > { %p4728_p1 = scmp.eq.s32.totalorder (!%p4727_p13), %s3417_s6, 0 }
  0x2f   : > { %286 = sbr.rel (%p4727_p13) target bundleno = 897 (0x381), region = 48 }
  0x36   : > { %3317 = dma.done.wait (%p4728_p1), [#allocation4], 12288   ;;  %p4729_p0 = pmov %p4728_p1 }
  0x37   : > { %s2838_s23 = sshll.u32 %s3417_s6, 5  ;;  %v3343_v1 = vmov 0.0   ;;  %v410_v2 = vld [vmem:[%s4713_s2 + $0x8] sm:$0xff]  ;;  %v412_v3 = vld [vmem:[%s4713_s2 + $0x18] sm:$0xff]  ;;  %v409_v4 = vld [vmem:[%s4713_s2] sm:$0xff]  ;;  %vm415_vm0 = vcmask 64512  }
  0x38   : > { %3319 = vsyncadd (%p4729_p0), [#allocation4], 4294955008  ;;  %576 = vmatprep.mubr.f32.mxu0 %v3343_v1  ;;  %833 = vmatprep.mubr.f32.mxu1 %v3343_v1  ;;  %p326_p5 = scmp.lt.s32.totalorder %s2838_s23, 63  ;;  %v411_v5 = vld [vmem:[%s4713_s2 + $0x10] sm:$0xff]  ;;  %v3508_v7 = vld [vmem:[%s4712_s1] ss:$0 sm:$0xff] }
  0x39   : > { %512 = vmatprep.subr.mxu0 %v410_v2  ;;  %769 = vmatprep.subr.mxu1 %v412_v3  ;;  %v414_v9 = vld [vmem:[%s4713_s2 + $0x28] sm:$0xff]  ;;  %v413_v10 = vld [vmem:[%s4713_s2 + $0x20] sm:$0xff]  ;;  %v3344_v12 = vmov 0.0|0.0   ;;  %v1733_v37 = vld [vmem:[#allocation3 + $0x110] sm:$0xff]  ;;  %s315_s14 = sand.u32 1, %s3330_s30   ;;  %s2946_s25 = sshll.u32 %s3417_s6, 12 }
  0x3a   : > { %s4737_s23 = smov (!%p326_p5, %s2838_s23), 63  ;;  %513 = vmatpush1.msra.mxu0 %v409_v4  ;;  %770 = vmatpush1.msra.mxu1 %v411_v5  ;;  %v1731_v31 = vld [vmem:[#allocation3 + $0x100] sm:$0xff]  ;;  %v1732_v32 = vld [vmem:[#allocation3 + $0x108] sm:$0xff]  ;;  %v1734_v38 = vld [vmem:[#allocation3 + $0x118] sm:$0xff]  ;;  %s2837_s19 = sshll.u32 %s315_s14, 8  ;;  %vm2676_vm1 = vcmask 7168  }
  0x3b   : > { %s2839_s18 = sshll.u32 %s4737_s23, 3  ;;  %1026 = vmatprep.subr.mxu0 %v414_v9  ;;  %2995 = vmatprep.subr.bf16.mxu1 %v3344_v12  ;;  %v2996_v34 = vpack.c.bf16 %v1732_v32, %v1731_v31  ;;  %v2999_v48 = vpack.c.bf16 %v1734_v38, %v1733_v37  ;;  %v1735_v52 = vld [vmem:[#allocation3 + $0x120] sm:$0xff]  ;;  %v1736_v53 = vld [vmem:[#allocation3 + $0x128] sm:$0xff]  ;;  %v1737_v62 = vld [vmem:[#allocation3 + $0x130] sm:$0xff]  ;;  %s4446_s21 = scalar_lea.vmem [#allocation6], %s2837_s19 }
  0x3c   : > { %s3490_s24 = scalar_lea.vmem %s4711_s0, %s2839_s18  ;;  %v3002_v61 = vpack.c.bf16 %v1736_v53, %v1735_v52  ;;  %v1738_v63 = vld [vmem:[#allocation3 + $0x138] sm:$0xff]  ;;  %v1739_v4 = vld [vmem:[#allocation3 + $0x140] sm:$0xff]  ;;  %v1740_v5 = vld [vmem:[#allocation3 + $0x148] sm:$0xff]  ;;  %s2728_s26 = sshll.u32 %s4446_s21, 4  ;;  %s4563_s26 = int_to_ptr.vmem [resolvable:$true] %s2728_s26 }
  0x3d   : > { %v338_v6 = vld [vmem:[%s3490_s24] sm:$0xff]  ;;  %v339_v11 = vld [vmem:[%s3490_s24 + $0x8] sm:$0xff]  ;;  %v340_v14 = vld [vmem:[%s3490_s24 + $0x10] sm:$0xff]  ;;  %v3005_v3 = vpack.c.bf16 %v1738_v63, %v1737_v62  ;;  %s4561_s28 = scalar_lea.hbm %s4718_s7, %s2946_s25  ;;  %s4570_s19 = scalar_lea.vmem %s4719_s8, %s2839_s18 }
  0x3e   : > { %v3511_v8 = vsub.f32 %v338_v6, %v3508_v7  ;;  %v3526_v13 = vsub.f32 %v339_v11, %v3508_v7  ;;  %v341_v15 = vld [vmem:[%s3490_s24 + $0x18] sm:$0xff]  ;;  %v354_v16 = vld [vmem:[%s3490_s24 + $0x80] sm:$0xff]  ;;  %v3539_v17 = vsub.f32 %v340_v14, %v3508_v7  ;;  %v355_v19 = vld [vmem:[%s3490_s24 + $0x88] sm:$0xff]  ;;  %s4575_s6 = scalar_lea.sflag [#allocation5], %s315_s14  ;;  %s3272_s22 = scalar_lea.vmem %s4563_s26, 4096 }
  0x3f   : > { %v3542_v18 = vsub.f32 %v354_v16, %v3508_v7  ;;  %v356_v20 = vld [vmem:[%s3490_s24 + $0x90] sm:$0xff]  ;;  %v357_v21 = vld [vmem:[%s3490_s24 + $0x98] sm:$0xff]  ;;  %v3550_v22 = vsub.f32 %v355_v19, %v3508_v7  ;;  %v358_v25 = vld [vmem:[%s3490_s24 + $0xa0] sm:$0xff]  ;;  %v3580_v39 = vsub.f32 %v341_v15, %v3508_v7  ;;  %p3273_p6 = scmp.ne.s32.totalorder %s4563_s26, %s3272_s22  ;;  %p4730_p9 = scmp.ne.s32.totalorder %s4723_s16, 0 }
  0x40   : > { %2843 = vmatmul.mubr.msk.f32.vlgmr.msra.gmra.mrb[0].mxu0 %vm415_vm0, %v3511_v8  ;;  %2875 = vmatmul.mubr.msk.f32.vlgmr.msra.gmra.mrb[0].mxu1 %vm415_vm0, %v3511_v8  ;;  %v3553_v23 = vsub.f32 %v356_v20, %v3508_v7  ;;  %v3556_v24 = vsub.f32 %v357_v21, %v3508_v7  ;;  %v359_v26 = vld [vmem:[%s3490_s24 + $0xa8] sm:$0xff]  ;;  %v360_v27 = vld [vmem:[%s3490_s24 + $0xb0] sm:$0xff]  ;;  %v3562_v28 = vsub.f32 %v358_v25, %v3508_v7  ;;  %v361_v33 = vld [vmem:[%s3490_s24 + $0xb8] sm:$0xff]  ;;  %s3345_s23 = smov [#allocation6]  }
  0x41   : > { %1027 = vmatpush1.msra.mxu0 %v413_v10  ;;  %582 = vmatprep.mubr.f32.mxu0 %v3343_v1  ;;  %v3565_v29 = vsub.f32 %v359_v26, %v3508_v7  ;;  %v3568_v30 = vsub.f32 %v360_v27, %v3508_v7  ;;  %v3572_v35 = vsub.f32 %v361_v33, %v3508_v7  ;;  %v362_v36 = vld [vmem:[%s3490_s24 + $0xc0] sm:$0xff]  ;;  %v363_v41 = vld [vmem:[%s3490_s24 + $0xc8] sm:$0xff]  ;;  %v364_v42 = vld [vmem:[%s3490_s24 + $0xd0] sm:$0xff]  ;;  %p3274_p10 = pnand %p3273_p6, %p4730_p9  ;;  %s3276_s20 = sshll.u32 %s3345_s23, 4  ;;  %s3277_s20 = int_to_ptr.vmem [resolvable:$false] %s3276_s20 }
  0x42   : > { %839 = vmatprep.mubr.f32.mxu1 %v3343_v1  ;;  %2947 = vmatprep.subr.bf16.mxu0 %v3344_v12  ;;  %v3583_v40 = vsub.f32 %v362_v36, %v3508_v7  ;;  %v342_v43 = vld [vmem:[%s3490_s24 + $0x20] sm:$0xff]  ;;  %v3591_v44 = vsub.f32 %v363_v41, %v3508_v7  ;;  %v3594_v45 = vsub.f32 %v364_v42, %v3508_v7  ;;  %v365_v46 = vld [vmem:[%s3490_s24 + $0xd8] sm:$0xff]  ;;  %v367_v51 = vld [vmem:[%s3490_s24 + $0xe8] sm:$0xff]  ;;  %p3279_p2 = scmp.lt.s32.totalorder %s4563_s26, %s3277_s20 }
  0x43   : > { %v366_v47 = vld [vmem:[%s3490_s24 + $0xe0] sm:$0xff]  ;;  %2997 = vmatpush1.bf16.msra.mxu1 %v2996_v34  ;;  %v3599_v49 = vsub.f32 %v365_v46, %v3508_v7  ;;  %v3607_v54 = vsub.f32 %v367_v51, %v3508_v7  ;;  %v368_v55 = vld [vmem:[%s3490_s24 + $0xf0] sm:$0xff]  ;;  %v3615_v56 = vsub.f32 %v342_v43, %v3508_v7  ;;  %v369_v58 = vld [vmem:[%s3490_s24 + $0xf8] sm:$0xff]  ;;  %v3008_v10 = vpack.c.bf16 %v1740_v5, %v1739_v4  ;;  %p3275_p12 = pneg %p3274_p10 }
  0x44   : > { %2844 = vmatmul.mubr.msk.f32.gmra.mrb[2].mxu0 %vm415_vm0, %v3526_v13  ;;  %2876 = vmatmul.mubr.msk.f32.gmra.mrb[2].mxu1 %vm415_vm0, %v3526_v13  ;;  %v3602_v50 = vsub.f32 %v366_v47, %v3508_v7  ;;  %v3618_v57 = vsub.f32 %v368_v55, %v3508_v7  ;;  %v343_v59 = vld [vmem:[%s3490_s24 + $0x28] sm:$0xff]  ;;  %v3625_v60 = vsub.f32 %v369_v58, %v3508_v7  ;;  %v344_v2 = vld [vmem:[%s3490_s24 + $0x30] sm:$0xff]  ;;  %v345_v9 = vld [vmem:[%s3490_s24 + $0x38] sm:$0xff] }
  0x45   : > { %588 = vmatprep.mubr.f32.mxu0 %v3343_v1  ;;  %845 = vmatprep.mubr.f32.mxu1 %v3343_v1  ;;  %v3633_v0 = vsub.f32 %v343_v59, %v3508_v7  ;;  %v3644_v6 = vsub.f32 %v344_v2, %v3508_v7  ;;  %v1741_v11 = vld [vmem:[#allocation3 + $0x150] sm:$0xff]  ;;  %v1742_v14 = vld [vmem:[#allocation3 + $0x158] sm:$0xff]  ;;  %v3655_v15 = vsub.f32 %v345_v9, %v3508_v7  ;;  %v1743_v20 = vld [vmem:[#allocation3 + $0x160] sm:$0xff] }
  0x46   : > { %2998 = vmatprep.subr.bf16.mxu1 %v3344_v12  ;;  %v346_v16 = vld [vmem:[%s3490_s24 + $0x40] sm:$0xff]  ;;  %v3011_v19 = vpack.c.bf16 %v1742_v14, %v1741_v11  ;;  %v1744_v21 = vld [vmem:[#allocation3 + $0x168] sm:$0xff]  ;;  %v1745_v31 = vld [vmem:[#allocation3 + $0x170] sm:$0xff] }
  0x47   : > { %3000 = vmatpush1.bf16.msra.mxu1 %v2999_v48  ;;  %v3666_v25 = vsub.f32 %v346_v16, %v3508_v7  ;;  %v347_v26 = vld [vmem:[%s3490_s24 + $0x48] sm:$0xff]  ;;  %v3014_v27 = vpack.c.bf16 %v1744_v21, %v1743_v20  ;;  %v1746_v32 = vld [vmem:[#allocation3 + $0x178] sm:$0xff]  ;;  %v348_v34 = vld [vmem:[%s3490_s24 + $0x50] sm:$0xff] }
  0x48   : > { %2845 = vmatmul.mubr.msk.f32.gmra.mrb[4].mxu0 %vm415_vm0, %v3539_v17  ;;  %2877 = vmatmul.mubr.msk.f32.gmra.mrb[4].mxu1 %vm415_vm0, %v3539_v17  ;;  %v3677_v33 = vsub.f32 %v347_v26, %v3508_v7  ;;  %v3017_v36 = vpack.c.bf16 %v1746_v32, %v1745_v31  ;;  %v1747_v37 = vld [vmem:[#allocation3 + $0x180] sm:$0xff]  ;;  %v1748_v38 = vld [vmem:[#allocation3 + $0x188] sm:$0xff]  ;;  %v3688_v41 = vsub.f32 %v348_v34, %v3508_v7  ;;  %v349_v42 = vld [vmem:[%s3490_s24 + $0x58] sm:$0xff] }
  0x49   : > { %594 = vmatprep.mubr.f32.mxu0 %v3343_v1  ;;  %851 = vmatprep.mubr.f32.mxu1 %v3343_v1  ;;  %v3020_v43 = vpack.c.bf16 %v1748_v38, %v1747_v37  ;;  %v1749_v46 = vld [vmem:[#allocation3 + $0x190] sm:$0xff]  ;;  %v1750_v47 = vld [vmem:[#allocation3 + $0x198] sm:$0xff]  ;;  %v3699_v48 = vsub.f32 %v349_v42, %v3508_v7  ;;  %v1751_v53 = vld [vmem:[#allocation3 + $0x1a0] sm:$0xff] }
  0x4a   : > { %3001 = vmatprep.subr.bf16.mxu1 %v3344_v12  ;;  %v350_v51 = vld [vmem:[%s3490_s24 + $0x60] sm:$0xff]  ;;  %v3023_v52 = vpack.c.bf16 %v1750_v47, %v1749_v46  ;;  %v1752_v55 = vld [vmem:[#allocation3 + $0x1a8] sm:$0xff]  ;;  %v1753_v2 = vld [vmem:[#allocation3 + $0x1b0] sm:$0xff] }
  0x4b   : > { %3003 = vmatpush1.bf16.msra.mxu1 %v3002_v61  ;;  %v3710_v58 = vsub.f32 %v350_v51, %v3508_v7  ;;  %v351_v59 = vld [vmem:[%s3490_s24 + $0x68] sm:$0xff]  ;;  %v3026_v61 = vpack.c.bf16 %v1752_v55, %v1751_v53  ;;  %v352_v63 = vld [vmem:[%s3490_s24 + $0x70] sm:$0xff]  ;;  %v353_v9 = vld [vmem:[%s3490_s24 + $0x78] sm:$0xff] }
  0x4c   : > { %2846 = vmatmul.mubr.msk.f32.gmra.mrb[6].mxu0 %vm415_vm0, %v3580_v39  ;;  %2878 = vmatmul.mubr.msk.f32.gmra.mrb[6].mxu1 %vm415_vm0, %v3580_v39  ;;  %v3721_v62 = vsub.f32 %v351_v59, %v3508_v7  ;;  %v3732_v5 = vsub.f32 %v352_v63, %v3508_v7  ;;  %v1755_v11 = vld [vmem:[#allocation3 + $0x1c0] sm:$0xff]  ;;  %v1756_v14 = vld [vmem:[#allocation3 + $0x1c8] sm:$0xff]  ;;  %v1761_v31 = vld [vmem:[#allocation3 + $0x1f0] sm:$0xff] }
  0x4d   : > { %600 = vmatprep.mubr.f32.mxu0 %v3343_v1  ;;  %857 = vmatprep.mubr.f32.mxu1 %v3343_v1  ;;  %v3032_v16 = vpack.c.bf16 %v1756_v14, %v1755_v11  ;;  %v1759_v21 = vld [vmem:[#allocation3 + $0x1e0] sm:$0xff]  ;;  %v1760_v26 = vld [vmem:[#allocation3 + $0x1e8] sm:$0xff]  ;;  %v1762_v32 = vld [vmem:[#allocation3 + $0x1f8] sm:$0xff] }
  0x4e   : > { %3004 = vmatprep.subr.bf16.mxu1 %v3344_v12  ;;  %v3041_v34 = vpack.c.bf16 %v1762_v32, %v1761_v31  ;;  %v1700_v37 = vld [vmem:[#allocation3 + $0x8] sm:$0xff]  ;;  %v1701_v42 = vld [vmem:[#allocation3 + $0x10] sm:$0xff]  ;;  %v1703_v47 = vld [vmem:[#allocation3 + $0x20] sm:$0xff] }
  0x4f   : > { %3006 = vmatpush1.bf16.msra.mxu1 %v3005_v3  ;;  %v1754_v3 = vld [vmem:[#allocation3 + $0x1b8] sm:$0xff]  ;;  %v1704_v51 = vld [vmem:[#allocation3 + $0x28] sm:$0xff]  ;;  %v1705_v53 = vld [vmem:[#allocation3 + $0x30] sm:$0xff] }
  0x50   : > { %2847 = vmatmul.mubr.msk.f32.gmra.mrb[8].mxu0 %vm415_vm0, %v3615_v56  ;;  %2879 = vmatmul.mubr.msk.f32.gmra.mrb[8].mxu1 %vm415_vm0, %v3615_v56  ;;  %v3029_v4 = vpack.c.bf16 %v1754_v3, %v1753_v2  ;;  %v1706_v55 = vld [vmem:[#allocation3 + $0x38] sm:$0xff]  ;;  %v1707_v59 = vld [vmem:[#allocation3 + $0x40] sm:$0xff]  ;;  %v1709_v63 = vld [vmem:[#allocation3 + $0x50] sm:$0xff] }
  0x51   : > { %606 = vmatprep.mubr.f32.mxu0 %v3343_v1  ;;  %863 = vmatprep.mubr.f32.mxu1 %v3343_v1  ;;  %v1710_v2 = vld [vmem:[#allocation3 + $0x58] sm:$0xff]  ;;  %v1711_v3 = vld [vmem:[#allocation3 + $0x60] sm:$0xff]  ;;  %v1724_v32 = vld [vmem:[#allocation3 + $0xc8] sm:$0xff] }
  0x52   : > { %3007 = vmatprep.subr.bf16.mxu1 %v3344_v12  ;;  %v1714_v11 = vld [vmem:[#allocation3 + $0x78] sm:$0xff]  ;;  %v1715_v14 = vld [vmem:[#allocation3 + $0x80] sm:$0xff] }
  0x53   : > { %3009 = vmatpush1.bf16.msra.mxu1 %v3008_v10  ;;  %v3743_v10 = vsub.f32 %v353_v9, %v3508_v7  ;;  %v1757_v7 = vld [vmem:[#allocation3 + $0x1d0] sm:$0xff]  ;;  %v1723_v31 = vld [vmem:[#allocation3 + $0xc0] sm:$0xff] }
  0x54   : > { %2848 = vmatmul.mubr.msk.f32.gmra.mrb[10].mxu0 %vm415_vm0, %v3633_v0  ;;  %2880 = vmatmul.mubr.msk.f32.gmra.mrb[10].mxu1 %vm415_vm0, %v3633_v0  ;;  %v1713_v9 = vld [vmem:[#allocation3 + $0x70] sm:$0xff] }
  0x55   : > { %612 = vmatprep.mubr.f32.mxu0 %v3343_v1  ;;  %869 = vmatprep.mubr.f32.mxu1 %v3343_v1 }
  0x56   : > { %3010 = vmatprep.subr.bf16.mxu1 %v3344_v12 }
  0x57   : > { %3012 = vmatpush1.bf16.msra.mxu1 %v3011_v19  ;;  %v1758_v19 = vld [vmem:[#allocation3 + $0x1d8] sm:$0xff] }
  0x58   : > { %2849 = vmatmul.mubr.msk.f32.gmra.mrb[12].mxu0 %vm415_vm0, %v3644_v6  ;;  %2881 = vmatmul.mubr.msk.f32.gmra.mrb[12].mxu1 %vm415_vm0, %v3644_v6  ;;  %v3035_v20 = vpack.c.bf16 %v1758_v19, %v1757_v7  ;;  %v1717_v7 = vld [vmem:[#allocation3 + $0x90] sm:$0xff]  ;;  %v1718_v19 = vld [vmem:[#allocation3 + $0x98] sm:$0xff] }
  0x59   : > { %618 = vmatprep.mubr.f32.mxu0 %v3343_v1  ;;  %875 = vmatprep.mubr.f32.mxu1 %v3343_v1 }
  0x5a   : > { %3013 = vmatprep.subr.bf16.mxu1 %v3344_v12 }
  0x5b   : > { %3015 = vmatpush1.bf16.msra.mxu1 %v3014_v27  ;;  %v3038_v27 = vpack.c.bf16 %v1760_v26, %v1759_v21  ;;  %v1720_v21 = vld [vmem:[#allocation3 + $0xa8] sm:$0xff]  ;;  %v1721_v26 = vld [vmem:[#allocation3 + $0xb0] sm:$0xff] }
  0x5c   : > { %2850 = vmatmul.mubr.msk.f32.gmra.mrb[14].mxu0 %vm415_vm0, %v3655_v15  ;;  %2882 = vmatmul.mubr.msk.f32.gmra.mrb[14].mxu1 %vm415_vm0, %v3655_v15 }
  0x5d   : > { %624 = vmatprep.mubr.f32.mxu0 %v3343_v1  ;;  %881 = vmatprep.mubr.f32.mxu1 %v3343_v1 }
  0x5e   : > { %3016 = vmatprep.subr.bf16.mxu1 %v3344_v12 }
  0x5f   : > { %3018 = vmatpush1.bf16.msra.mxu1 %v3017_v36  ;;  %v1699_v36 = vld [vmem:[#allocation3] sm:$0xff] }
  0x60   : > { %2851 = vmatmul.mubr.msk.f32.gmra.mrb[16].mxu0 %vm415_vm0, %v3666_v25  ;;  %2883 = vmatmul.mubr.msk.f32.gmra.mrb[16].mxu1 %vm415_vm0, %v3666_v25  ;;  %v2948_v38 = vpack.c.bf16 %v1700_v37, %v1699_v36  ;;  %v1726_v36 = vld [vmem:[#allocation3 + $0xd8] sm:$0xff]  ;;  %v1727_v37 = vld [vmem:[#allocation3 + $0xe0] sm:$0xff] }
  0x61   : > { %630 = vmatprep.mubr.f32.mxu0 %v3343_v1  ;;  %887 = vmatprep.mubr.f32.mxu1 %v3343_v1 }
  0x62   : > { %3019 = vmatprep.subr.bf16.mxu1 %v3344_v12 }
  0x63   : > { %3021 = vmatpush1.bf16.msra.mxu1 %v3020_v43  ;;  %v1702_v43 = vld [vmem:[#allocation3 + $0x18] sm:$0xff] }
  0x64   : > { %2852 = vmatmul.mubr.msk.f32.gmra.mrb[18].mxu0 %vm415_vm0, %v3677_v33  ;;  %2884 = vmatmul.mubr.msk.f32.gmra.mrb[18].mxu1 %vm415_vm0, %v3677_v33  ;;  %v2951_v46 = vpack.c.bf16 %v1702_v43, %v1701_v42  ;;  %v1729_v42 = vld [vmem:[#allocation3 + $0xf0] sm:$0xff]  ;;  %v1730_v43 = vld [vmem:[#allocation3 + $0xf8] sm:$0xff] }
  0x65   : > { %636 = vmatprep.mubr.f32.mxu0 %v3343_v1  ;;  %893 = vmatprep.mubr.f32.mxu1 %v3343_v1 }
  0x66   : > { %3022 = vmatprep.subr.bf16.mxu1 %v3344_v12 }
  0x67   : > { %3024 = vmatpush1.bf16.msra.mxu1 %v3023_v52  ;;  %v2954_v52 = vpack.c.bf16 %v1704_v51, %v1703_v47 }
  0x68   : > { %2853 = vmatmul.mubr.msk.f32.gmra.mrb[20].mxu0 %vm415_vm0, %v3688_v41  ;;  %2885 = vmatmul.mubr.msk.f32.gmra.mrb[20].mxu1 %vm415_vm0, %v3688_v41 }
  0x69   : > { %642 = vmatprep.mubr.f32.mxu0 %v3343_v1  ;;  %899 = vmatprep.mubr.f32.mxu1 %v3343_v1 }
  0x6a   : > { %3025 = vmatprep.subr.bf16.mxu1 %v3344_v12 }
  0x6b   : > { %3027 = vmatpush1.bf16.msra.mxu1 %v3026_v61  ;;  %v1708_v61 = vld [vmem:[#allocation3 + $0x48] sm:$0xff] }
  0x6c   : > { %2854 = vmatmul.mubr.msk.f32.gmra.mrb[22].mxu0 %vm415_vm0, %v3699_v48  ;;  %2886 = vmatmul.mubr.msk.f32.gmra.mrb[22].mxu1 %vm415_vm0, %v3699_v48 }
  0x6d   : > { %648 = vmatprep.mubr.f32.mxu0 %v3343_v1  ;;  %905 = vmatprep.mubr.f32.mxu1 %v3343_v1 }
  0x6e   : > { %3028 = vmatprep.subr.bf16.mxu1 %v3344_v12 }
  0x6f   : > { %3030 = vmatpush1.bf16.msra.mxu1 %v3029_v4  ;;  %v1712_v4 = vld [vmem:[#allocation3 + $0x68] sm:$0xff] }
  0x70   : > { %2855 = vmatmul.mubr.msk.f32.gmra.mrb[24].mxu0 %vm415_vm0, %v3710_v58  ;;  %2887 = vmatmul.mubr.msk.f32.gmra.mrb[24].mxu1 %vm415_vm0, %v3710_v58 }
  0x71   : > { %654 = vmatprep.mubr.f32.mxu0 %v3343_v1  ;;  %911 = vmatprep.mubr.f32.mxu1 %v3343_v1 }
  0x72   : > { %3031 = vmatprep.subr.bf16.mxu1 %v3344_v12 }
  0x73   : > { %3033 = vmatpush1.bf16.msra.mxu1 %v3032_v16  ;;  %v1716_v16 = vld [vmem:[#allocation3 + $0x88] sm:$0xff] }
  0x74   : > { %2856 = vmatmul.mubr.msk.f32.gmra.mrb[26].mxu0 %vm415_vm0, %v3721_v62  ;;  %2888 = vmatmul.mubr.msk.f32.gmra.mrb[26].mxu1 %vm415_vm0, %v3721_v62 }
  0x75   : > { %660 = vmatprep.mubr.f32.mxu0 %v3343_v1  ;;  %917 = vmatprep.mubr.f32.mxu1 %v3343_v1 }
  0x76   : > { %3034 = vmatprep.subr.bf16.mxu1 %v3344_v12 }
  0x77   : > { %3036 = vmatpush1.bf16.msra.mxu1 %v3035_v20  ;;  %v1719_v20 = vld [vmem:[#allocation3 + $0xa0] sm:$0xff] }
  0x78   : > { %2857 = vmatmul.mubr.msk.f32.gmra.mrb[28].mxu0 %vm415_vm0, %v3732_v5  ;;  %2889 = vmatmul.mubr.msk.f32.gmra.mrb[28].mxu1 %vm415_vm0, %v3732_v5 }
  0x79   : > { %666 = vmatprep.mubr.f32.mxu0 %v3343_v1  ;;  %923 = vmatprep.mubr.f32.mxu1 %v3343_v1 }
  0x7a   : > { %3037 = vmatprep.subr.bf16.mxu1 %v3344_v12 }
  0x7b   : > { %3039 = vmatpush1.bf16.msra.mxu1 %v3038_v27  ;;  %v1722_v27 = vld [vmem:[#allocation3 + $0xb8] sm:$0xff] }
  0x7c   : > { %2858 = vmatmul.mubr.msk.f32.gmra.mrb[30].mxu0 %vm415_vm0, %v3743_v10  ;;  %2890 = vmatmul.mubr.msk.f32.gmra.mrb[30].mxu1 %vm415_vm0, %v3743_v10 }
  0x7d   : > { %672 = vmatprep.mubr.f32.mxu0 %v3343_v1  ;;  %929 = vmatprep.mubr.f32.mxu1 %v3343_v1 }
  0x7e   : > { %3040 = vmatprep.subr.bf16.mxu1 %v3344_v12 }
  0x7f   : > { %3042 = vmatpush1.bf16.msra.mxu1 %v3041_v34  ;;  %v1725_v34 = vld [vmem:[#allocation3 + $0xd0] sm:$0xff] }
  0x80   : > { %2859 = vmatmul.mubr.msk.f32.gmra.mrb[32].mxu0 %vm415_vm0, %v3542_v18  ;;  %2891 = vmatmul.mubr.msk.f32.gmra.mrb[32].mxu1 %vm415_vm0, %v3542_v18 }
  0x81   : > { %678 = vmatprep.mubr.f32.mxu0 %v3343_v1  ;;  %935 = vmatprep.mubr.f32.mxu1 %v3343_v1 }
  0x82   : > { %3043 = vmatprep.subr.bf16.mxu1 %v3344_v12 }
  0x84   : > { %2860 = vmatmul.mubr.msk.f32.gmra.mrb[34].mxu0 %vm415_vm0, %v3550_v22  ;;  %2892 = vmatmul.mubr.msk.f32.gmra.mrb[34].mxu1 %vm415_vm0, %v3550_v22 }
  0x85   : > { %684 = vmatprep.mubr.f32.mxu0 %v3343_v1  ;;  %941 = vmatprep.mubr.f32.mxu1 %v3343_v1 }
  0x88   : > { %2861 = vmatmul.mubr.msk.f32.gmra.mrb[36].mxu0 %vm415_vm0, %v3553_v23  ;;  %2893 = vmatmul.mubr.msk.f32.gmra.mrb[36].mxu1 %vm415_vm0, %v3553_v23 }
  0x89   : > { %690 = vmatprep.mubr.f32.mxu0 %v3343_v1  ;;  %947 = vmatprep.mubr.f32.mxu1 %v3343_v1 }
  0x8c   : > { %2862 = vmatmul.mubr.msk.f32.gmra.mrb[38].mxu0 %vm415_vm0, %v3556_v24  ;;  %2894 = vmatmul.mubr.msk.f32.gmra.mrb[38].mxu1 %vm415_vm0, %v3556_v24 }
  0x8d   : > { %696 = vmatprep.mubr.f32.mxu0 %v3343_v1  ;;  %953 = vmatprep.mubr.f32.mxu1 %v3343_v1 }
  0x90   : > { %2863 = vmatmul.mubr.msk.f32.gmra.mrb[40].mxu0 %vm415_vm0, %v3562_v28  ;;  %2895 = vmatmul.mubr.msk.f32.gmra.mrb[40].mxu1 %vm415_vm0, %v3562_v28 }
  0x91   : > { %702 = vmatprep.mubr.f32.mxu0 %v3343_v1  ;;  %959 = vmatprep.mubr.f32.mxu1 %v3343_v1 }
  0x94   : > { %2864 = vmatmul.mubr.msk.f32.gmra.mrb[42].mxu0 %vm415_vm0, %v3565_v29  ;;  %2896 = vmatmul.mubr.msk.f32.gmra.mrb[42].mxu1 %vm415_vm0, %v3565_v29 }
  0x95   : > { %708 = vmatprep.mubr.f32.mxu0 %v3343_v1  ;;  %965 = vmatprep.mubr.f32.mxu1 %v3343_v1 }
  0x98   : > { %2865 = vmatmul.mubr.msk.f32.gmra.mrb[44].mxu0 %vm415_vm0, %v3568_v30  ;;  %2897 = vmatmul.mubr.msk.f32.gmra.mrb[44].mxu1 %vm415_vm0, %v3568_v30 }
  0x99   : > { %714 = vmatprep.mubr.f32.mxu0 %v3343_v1  ;;  %971 = vmatprep.mubr.f32.mxu1 %v3343_v1 }
  0x9c   : > { %2866 = vmatmul.mubr.msk.f32.gmra.mrb[46].mxu0 %vm415_vm0, %v3572_v35  ;;  %2898 = vmatmul.mubr.msk.f32.gmra.mrb[46].mxu1 %vm415_vm0, %v3572_v35 }
  0x9d   : > { %720 = vmatprep.mubr.f32.mxu0 %v3343_v1  ;;  %977 = vmatprep.mubr.f32.mxu1 %v3343_v1 }
  0xa0   : > { %2867 = vmatmul.mubr.msk.f32.gmra.mrb[48].mxu0 %vm415_vm0, %v3583_v40  ;;  %2899 = vmatmul.mubr.msk.f32.gmra.mrb[48].mxu1 %vm415_vm0, %v3583_v40 }
  0xa1   : > { %726 = vmatprep.mubr.f32.mxu0 %v3343_v1  ;;  %983 = vmatprep.mubr.f32.mxu1 %v3343_v1 }
  0xa4   : > { %2868 = vmatmul.mubr.msk.f32.gmra.mrb[50].mxu0 %vm415_vm0, %v3591_v44  ;;  %2900 = vmatmul.mubr.msk.f32.gmra.mrb[50].mxu1 %vm415_vm0, %v3591_v44 }
  0xa5   : > { %732 = vmatprep.mubr.f32.mxu0 %v3343_v1  ;;  %989 = vmatprep.mubr.f32.mxu1 %v3343_v1 }
  0xa8   : > { %2869 = vmatmul.mubr.msk.f32.gmra.mrb[52].mxu0 %vm415_vm0, %v3594_v45  ;;  %2901 = vmatmul.mubr.msk.f32.gmra.mrb[52].mxu1 %vm415_vm0, %v3594_v45 }
  0xa9   : > { %738 = vmatprep.mubr.f32.mxu0 %v3343_v1  ;;  %995 = vmatprep.mubr.f32.mxu1 %v3343_v1 }
  0xac   : > { %2870 = vmatmul.mubr.msk.f32.gmra.mrb[54].mxu0 %vm415_vm0, %v3599_v49  ;;  %2902 = vmatmul.mubr.msk.f32.gmra.mrb[54].mxu1 %vm415_vm0, %v3599_v49 }
  0xad   : > { %744 = vmatprep.mubr.f32.mxu0 %v3343_v1  ;;  %1001 = vmatprep.mubr.f32.mxu1 %v3343_v1 }
  0xb0   : > { %2871 = vmatmul.mubr.msk.f32.gmra.mrb[56].mxu0 %vm415_vm0, %v3602_v50  ;;  %2903 = vmatmul.mubr.msk.f32.gmra.mrb[56].mxu1 %vm415_vm0, %v3602_v50 }
  0xb1   : > { %750 = vmatprep.mubr.f32.mxu0 %v3343_v1  ;;  %1007 = vmatprep.mubr.f32.mxu1 %v3343_v1 }
  0xb4   : > { %2872 = vmatmul.mubr.msk.f32.gmra.mrb[58].mxu0 %vm415_vm0, %v3607_v54  ;;  %2904 = vmatmul.mubr.msk.f32.gmra.mrb[58].mxu1 %vm415_vm0, %v3607_v54 }
  0xb5   : > { %756 = vmatprep.mubr.f32.mxu0 %v3343_v1  ;;  %1013 = vmatprep.mubr.f32.mxu1 %v3343_v1 }
  0xb8   : > { %2873 = vmatmul.mubr.msk.f32.gmra.mrb[60].mxu0 %vm415_vm0, %v3618_v57  ;;  %2905 = vmatmul.mubr.msk.f32.gmra.mrb[60].mxu1 %vm415_vm0, %v3618_v57 }
  0xb9   : > { %762 = vmatprep.mubr.f32.mxu0 %v3343_v1  ;;  %1019 = vmatprep.mubr.f32.mxu1 %v3343_v1 }
  0xbc   : > { %2874 = vmatmul.mubr.msk.f32.gmra.mrb[62].mxu0 %vm415_vm0, %v3625_v60  ;;  %2906 = vmatmul.mubr.msk.f32.gmra.mrb[62].mxu1 %vm415_vm0, %v3625_v60 }
  0xbd   : > { %1090 = vmatprep.mubr.f32.mxu0 %v3343_v1 }
  0xc0   : > { %2907 = vmatmul.mubr.msk.f32.vlgmr.msra.gmra.mrb[64].mxu0 %vm415_vm0, %v3511_v8  ;;  %v2957_v8 = vpack.c.bf16 %v1706_v55, %v1705_v53  ;;  %v1763_v53 = vld [vmem:[#allocation3 + $0x200] sm:$0xff]  ;;  %v1764_v55 = vld [vmem:[#allocation3 + $0x208] sm:$0xff] }
  0xc1   : > { %1096 = vmatprep.mubr.f32.mxu0 %v3343_v1  ;;  %2949 = vmatpush1.bf16.msra.mxu0 %v2948_v38  ;;  %v1728_v38 = vld [vmem:[#allocation3 + $0xe8] sm:$0xff] }
  0xc2   : > { %2950 = vmatprep.subr.bf16.mxu0 %v3344_v12 }
  0xc4   : > { %2908 = vmatmul.mubr.msk.f32.gmra.mrb[66].mxu0 %vm415_vm0, %v3526_v13  ;;  %v2960_v13 = vpack.c.bf16 %v1708_v61, %v1707_v59 }
  0xc5   : > { %1102 = vmatprep.mubr.f32.mxu0 %v3343_v1  ;;  %2952 = vmatpush1.bf16.msra.mxu0 %v2951_v46 }
  0xc6   : > { %2953 = vmatprep.subr.bf16.mxu0 %v3344_v12 }
  0xc8   : > { %2909 = vmatmul.mubr.msk.f32.gmra.mrb[68].mxu0 %vm415_vm0, %v3539_v17  ;;  %v2963_v17 = vpack.c.bf16 %v1710_v2, %v1709_v63  ;;  %v3044_v63 = vpack.c.bf16 %v1764_v55, %v1763_v53 }
  0xc9   : > { %1108 = vmatprep.mubr.f32.mxu0 %v3343_v1  ;;  %2955 = vmatpush1.bf16.msra.mxu0 %v2954_v52 }
  0xca   : > { %2956 = vmatprep.subr.bf16.mxu0 %v3344_v12 }
  0xcc   : > { %2910 = vmatmul.mubr.msk.f32.gmra.mrb[70].mxu0 %vm415_vm0, %v3580_v39  ;;  %v2966_v39 = vpack.c.bf16 %v1712_v4, %v1711_v3 }
  0xcd   : > { %1114 = vmatprep.mubr.f32.mxu0 %v3343_v1  ;;  %2958 = vmatpush1.bf16.msra.mxu0 %v2957_v8 }
  0xce   : > { %2959 = vmatprep.subr.bf16.mxu0 %v3344_v12 }
  0xd0   : > { %2911 = vmatmul.mubr.msk.f32.gmra.mrb[72].mxu0 %vm415_vm0, %v3615_v56  ;;  %v2969_v56 = vpack.c.bf16 %v1714_v11, %v1713_v9 }
  0xd1   : > { %1120 = vmatprep.mubr.f32.mxu0 %v3343_v1  ;;  %2961 = vmatpush1.bf16.msra.mxu0 %v2960_v13 }
  0xd2   : > { %2962 = vmatprep.subr.bf16.mxu0 %v3344_v12 }
  0xd4   : > { %2912 = vmatmul.mubr.msk.f32.gmra.mrb[74].mxu0 %vm415_vm0, %v3633_v0  ;;  %v2972_v0 = vpack.c.bf16 %v1716_v16, %v1715_v14 }
  0xd5   : > { %1126 = vmatprep.mubr.f32.mxu0 %v3343_v1  ;;  %2964 = vmatpush1.bf16.msra.mxu0 %v2963_v17 }
  0xd6   : > { %2965 = vmatprep.subr.bf16.mxu0 %v3344_v12 }
  0xd8   : > { %2913 = vmatmul.mubr.msk.f32.gmra.mrb[76].mxu0 %vm415_vm0, %v3644_v6  ;;  %v2975_v6 = vpack.c.bf16 %v1718_v19, %v1717_v7 }
  0xd9   : > { %1132 = vmatprep.mubr.f32.mxu0 %v3343_v1  ;;  %2967 = vmatpush1.bf16.msra.mxu0 %v2966_v39  ;;  %v1766_v39 = vld [vmem:[#allocation3 + $0x218] sm:$0xff] }
  0xda   : > { %2968 = vmatprep.subr.bf16.mxu0 %v3344_v12 }
  0xdc   : > { %2914 = vmatmul.mubr.msk.f32.gmra.mrb[78].mxu0 %vm415_vm0, %v3655_v15  ;;  %v2978_v15 = vpack.c.bf16 %v1720_v21, %v1719_v20  ;;  %v1768_v20 = vld [vmem:[#allocation3 + $0x228] sm:$0xff] }
  0xdd   : > { %1138 = vmatprep.mubr.f32.mxu0 %v3343_v1  ;;  %2970 = vmatpush1.bf16.msra.mxu0 %v2969_v56 }
  0xde   : > { %2971 = vmatprep.subr.bf16.mxu0 %v3344_v12 }
  0xe0   : > { %2915 = vmatmul.mubr.msk.f32.gmra.mrb[80].mxu0 %vm415_vm0, %v3666_v25  ;;  %v2981_v25 = vpack.c.bf16 %v1722_v27, %v1721_v26 }
  0xe1   : > { %1144 = vmatprep.mubr.f32.mxu0 %v3343_v1  ;;  %2973 = vmatpush1.bf16.msra.mxu0 %v2972_v0 }
  0xe2   : > { %2974 = vmatprep.subr.bf16.mxu0 %v3344_v12 }
  0xe4   : > { %2916 = vmatmul.mubr.msk.f32.gmra.mrb[82].mxu0 %vm415_vm0, %v3677_v33  ;;  %v2984_v33 = vpack.c.bf16 %v1724_v32, %v1723_v31 }
  0xe5   : > { %1150 = vmatprep.mubr.f32.mxu0 %v3343_v1  ;;  %2976 = vmatpush1.bf16.msra.mxu0 %v2975_v6  ;;  %v1767_v6 = vld [vmem:[#allocation3 + $0x220] sm:$0xff] }
  0xe6   : > { %2977 = vmatprep.subr.bf16.mxu0 %v3344_v12 }
  0xe8   : > { %2917 = vmatmul.mubr.msk.f32.gmra.mrb[84].mxu0 %vm415_vm0, %v3688_v41  ;;  %v2987_v41 = vpack.c.bf16 %v1726_v36, %v1725_v34  ;;  %v1769_v34 = vld [vmem:[#allocation3 + $0x230] sm:$0xff]  ;;  %v1770_v36 = vld [vmem:[#allocation3 + $0x238] sm:$0xff] }
  0xe9   : > { %1156 = vmatprep.mubr.f32.mxu0 %v3343_v1  ;;  %2979 = vmatpush1.bf16.msra.mxu0 %v2978_v15 }
  0xea   : > { %2980 = vmatprep.subr.bf16.mxu0 %v3344_v12 }
  0xec   : > { %2918 = vmatmul.mubr.msk.f32.gmra.mrb[86].mxu0 %vm415_vm0, %v3699_v48  ;;  %v2990_v48 = vpack.c.bf16 %v1728_v38, %v1727_v37 }
  0xed   : > { %1162 = vmatprep.mubr.f32.mxu0 %v3343_v1  ;;  %2982 = vmatpush1.bf16.msra.mxu0 %v2981_v25  ;;  %v3050_v25 = vpack.c.bf16 %v1768_v20, %v1767_v6 }
  0xee   : > { %2983 = vmatprep.subr.bf16.mxu0 %v3344_v12 }
  0xf0   : > { %2919 = vmatmul.mubr.msk.f32.gmra.mrb[88].mxu0 %vm415_vm0, %v3710_v58  ;;  %v2993_v58 = vpack.c.bf16 %v1730_v43, %v1729_v42  ;;  %v3053_v42 = vpack.c.bf16 %v1770_v36, %v1769_v34 }
  0xf1   : > { %1168 = vmatprep.mubr.f32.mxu0 %v3343_v1  ;;  %2985 = vmatpush1.bf16.msra.mxu0 %v2984_v33 }
  0xf2   : > { %2986 = vmatprep.subr.bf16.mxu0 %v3344_v12 }
  0xf4   : > { %2920 = vmatmul.mubr.msk.f32.gmra.mrb[90].mxu0 %vm415_vm0, %v3721_v62  ;;  %v1477_v62 = vlaneseq }
  0xf5   : > { %1174 = vmatprep.mubr.f32.mxu0 %v3343_v1  ;;  %2988 = vmatpush1.bf16.msra.mxu0 %v2987_v41 }
  0xf6   : > { %2989 = vmatprep.subr.bf16.mxu0 %v3344_v12 }
  0xf8   : > { %2921 = vmatmul.mubr.msk.f32.gmra.mrb[92].mxu0 %vm415_vm0, %v3732_v5  ;;  %v3924_v5 = vshrl.u32 %v1477_v62, 7 }
  0xf9   : > { %1180 = vmatprep.mubr.f32.mxu0 %v3343_v1  ;;  %2991 = vmatpush1.bf16.msra.mxu0 %v2990_v48 }
  0xfa   : > { %2992 = vmatprep.subr.bf16.mxu0 %v3344_v12  ;;  %v1483_v36 = vsub.s32 1, %v3924_v5 }
  0xfc   : > { %2922 = vmatmul.mubr.msk.f32.gmra.mrb[94].mxu0 %vm415_vm0, %v3743_v10 }
  0xfd   : > { %1186 = vmatprep.mubr.f32.mxu0 %v3343_v1  ;;  %2994 = vmatpush1.bf16.msra.mxu0 %v2993_v58 }
 0x100   : > { %2923 = vmatmul.mubr.msk.f32.gmra.mrb[96].mxu0 %vm415_vm0, %v3542_v18  ;;  %v1491_v18 = vsub.s32 3, %v3924_v5 }
 0x101   : > { %1192 = vmatprep.mubr.f32.mxu0 %v3343_v1 }
 0x104   : > { %2924 = vmatmul.mubr.msk.f32.gmra.mrb[98].mxu0 %vm415_vm0, %v3550_v22  ;;  %v3935_v22 = vld [vmem:[%s4714_s3] sm:$0x3f] }
 0x105   : > { %1198 = vmatprep.mubr.f32.mxu0 %v3343_v1 }
 0x108   : > { %2925 = vmatmul.mubr.msk.f32.gmra.mrb[100].mxu0 %vm415_vm0, %v3553_v23  ;;  %v1487_v23 = vsub.s32 2, %v3924_v5 }
 0x109   : > { %1204 = vmatprep.mubr.f32.mxu0 %v3343_v1 }
 0x10a   : > { %v3945_v51 = vrot.slane %v3935_v22, %v1487_v23  ;;  %v1772_v23 = vld [vmem:[#allocation3 + $0x248] sm:$0xff] }
 0x10c   : > { %2926 = vmatmul.mubr.msk.f32.gmra.mrb[102].mxu0 %vm415_vm0, %v3556_v24  ;;  %v3942_v24 = vrot.slane %v3935_v22, %v1491_v18  ;;  %v1771_v18 = vld [vmem:[#allocation3 + $0x240] sm:$0xff] }
 0x10d   : > { %1210 = vmatprep.mubr.f32.mxu0 %v3343_v1  ;;  %v3056_v55 = vpack.c.bf16 %v1772_v23, %v1771_v18  ;;  %v1779_v18 = vld [vmem:[#allocation3 + $0x280] sm:$0xff]  ;;  %v1780_v23 = vld [vmem:[#allocation3 + $0x288] sm:$0xff] }
 0x110   : > { %2927 = vmatmul.mubr.msk.f32.gmra.mrb[104].mxu0 %vm415_vm0, %v3562_v28 }
 0x111   : > { %1216 = vmatprep.mubr.f32.mxu0 %v3343_v1 }
 0x113   : > { %v3939_v10 = vpop.f32.mrb[0].mxu0  ;;  %v835_v46 = vpop.f32.mrb[0].mxu1 }
 0x114   : > { %v1285_v47 = vmax.f32 %v835_v46, 0.0  ;;  %v3947_v28 = vpop.f32.mrb[1].mxu0  ;;  %v837_v52 = vpop.f32.mrb[1].mxu1  ;;  %2928 = vmatmul.mubr.msk.f32.gmra.mrb[106].mxu0 %vm415_vm0, %v3565_v29  ;;  %v1765_v29 = vld [vmem:[#allocation3 + $0x210] sm:$0xff] }
 0x115   : > { %v1286_v8 = vmax.f32 %v837_v52, 0.0  ;;  %1222 = vmatprep.mubr.f32.mxu0 %v3343_v1  ;;  %v3047_v16 = vpack.c.bf16 %v1766_v39, %v1765_v29 }
 0x116   : > { %v1509_v2 = vsub.f32 %v1285_v47, %v3945_v51 }
 0x117   : > { %v1510_v59 = vsub.f32 %v1286_v8, %v3942_v24  ;;  %v3953_v61 = vpop.f32.mrb[2].mxu0  ;;  %v841_v13 = vpop.f32.mrb[2].mxu1 }
 0x118   : > { %v1291_v17 = vmax.f32 %v841_v13, 0.0  ;;  %v3956_v3 = vpop.f32.mrb[3].mxu0  ;;  %v843_v4 = vpop.f32.mrb[3].mxu1  ;;  %2929 = vmatmul.mubr.msk.f32.gmra.mrb[108].mxu0 %vm415_vm0, %v3568_v30 }
 0x119   : > { %v1292_v9 = vmax.f32 %v843_v4, 0.0  ;;  %2084 = vmatprep.mubr.f32.mxu1 %v1510_v59  ;;  %1228 = vmatprep.mubr.f32.mxu0 %v3343_v1 }
 0x11a   : > { %2085 = vmatmul.mubr.f32.vlgmr.msra.gmra.mrb[64].mxu1 %v1509_v2  ;;  %v1515_v0 = vsub.f32 %v1291_v17, %v3945_v51  ;;  %v1774_v2 = vld [vmem:[#allocation3 + $0x258] sm:$0xff] }
 0x11b   : > { %v1516_v11 = vsub.f32 %v1292_v9, %v3942_v24  ;;  %v3962_v56 = vpop.f32.mrb[4].mxu0  ;;  %v847_v14 = vpop.f32.mrb[4].mxu1  ;;  %3045 = vmatpush1.bf16.msra.mxu1 %v3044_v63  ;;  %v1773_v63 = vld [vmem:[#allocation3 + $0x250] sm:$0xff] }
 0x11c   : > { %v1297_v7 = vmax.f32 %v847_v14, 0.0  ;;  %v3965_v19 = vpop.f32.mrb[5].mxu0  ;;  %v849_v30 = vpop.f32.mrb[5].mxu1  ;;  %2930 = vmatmul.mubr.msk.f32.gmra.mrb[110].mxu0 %vm415_vm0, %v3572_v35  ;;  %3046 = vmatprep.subr.bf16.mxu1 %v3344_v12  ;;  %v3059_v9 = vpack.c.bf16 %v1774_v2, %v1773_v63 }
 0x11d   : > { %v1298_v21 = vmax.f32 %v849_v30, 0.0  ;;  %2089 = vmatprep.mubr.f32.mxu1 %v1516_v11  ;;  %1234 = vmatprep.mubr.f32.mxu0 %v3343_v1 }
 0x11e   : > { %2090 = vmatmul.mubr.f32.gmra.mrb[66].mxu1 %v1515_v0  ;;  %v1521_v31 = vsub.f32 %v1297_v7, %v3945_v51  ;;  %v1775_v0 = vld [vmem:[#allocation3 + $0x260] sm:$0xff]  ;;  %v1776_v7 = vld [vmem:[#allocation3 + $0x268] sm:$0xff] }
 0x11f   : > { %v1522_v15 = vsub.f32 %v1298_v21, %v3942_v24  ;;  %v3972_v26 = vpop.f32.mrb[6].mxu0  ;;  %v853_v27 = vpop.f32.mrb[6].mxu1  ;;  %3048 = vmatpush1.bf16.msra.mxu1 %v3047_v16 }
 0x120   : > { %v1303_v32 = vmax.f32 %v853_v27, 0.0  ;;  %v3975_v35 = vpop.f32.mrb[7].mxu0  ;;  %v855_v33 = vpop.f32.mrb[7].mxu1  ;;  %2931 = vmatmul.mubr.msk.f32.gmra.mrb[112].mxu0 %vm415_vm0, %v3583_v40  ;;  %3049 = vmatprep.subr.bf16.mxu1 %v3344_v12 }
 0x121   : > { %v1304_v41 = vmax.f32 %v855_v33, 0.0  ;;  %2094 = vmatprep.mubr.f32.mxu1 %v1522_v15  ;;  %1240 = vmatprep.mubr.f32.mxu0 %v3343_v1  ;;  %v3062_v15 = vpack.c.bf16 %v1776_v7, %v1775_v0  ;;  %v1778_v33 = vld [vmem:[#allocation3 + $0x278] sm:$0xff]  ;;  %v1290_v0 = vmax.f32 %v3956_v3, 0.0  ;;  %v1784_v3 = vld [vmem:[#allocation3 + $0x2a8] sm:$0xff] }
 0x122   : > { %2095 = vmatmul.mubr.f32.gmra.mrb[68].mxu1 %v1521_v31  ;;  %v1527_v43 = vsub.f32 %v1303_v32, %v3945_v51  ;;  %v1777_v32 = vld [vmem:[#allocation3 + $0x270] sm:$0xff] }
 0x123   : > { %v1528_v37 = vsub.f32 %v1304_v41, %v3942_v24  ;;  %v3982_v38 = vpop.f32.mrb[8].mxu0  ;;  %v859_v48 = vpop.f32.mrb[8].mxu1  ;;  %3051 = vmatpush1.bf16.msra.mxu1 %v3050_v25 }
 0x124   : > { %v1309_v58 = vmax.f32 %v859_v48, 0.0  ;;  %v3985_v40 = vpop.f32.mrb[9].mxu0  ;;  %v861_v62 = vpop.f32.mrb[9].mxu1  ;;  %2932 = vmatmul.mubr.msk.f32.gmra.mrb[114].mxu0 %vm415_vm0, %v3591_v44  ;;  %3052 = vmatprep.subr.bf16.mxu1 %v3344_v12 }
 0x125   : > { %v1310_v46 = vmax.f32 %v861_v62, 0.0  ;;  %2099 = vmatprep.mubr.f32.mxu1 %v1528_v37  ;;  %1246 = vmatprep.mubr.f32.mxu0 %v3343_v1 }
 0x126   : > { %2100 = vmatmul.mubr.f32.gmra.mrb[70].mxu1 %v1527_v43  ;;  %v1533_v8 = vsub.f32 %v1309_v58, %v3945_v51 }
 0x127   : > { %v1534_v47 = vsub.f32 %v1310_v46, %v3942_v24  ;;  %v3992_v52 = vpop.f32.mrb[10].mxu0  ;;  %v865_v53 = vpop.f32.mrb[10].mxu1  ;;  %3054 = vmatpush1.bf16.msra.mxu1 %v3053_v42  ;;  %v3065_v42 = vpack.c.bf16 %v1778_v33, %v1777_v32  ;;  %v1296_v33 = vmax.f32 %v3965_v19, 0.0 }
 0x128   : > { %v1315_v59 = vmax.f32 %v865_v53, 0.0  ;;  %v3995_v44 = vpop.f32.mrb[11].mxu0  ;;  %v867_v13 = vpop.f32.mrb[11].mxu1  ;;  %2933 = vmatmul.mubr.msk.f32.gmra.mrb[116].mxu0 %vm415_vm0, %v3594_v45  ;;  %3055 = vmatprep.subr.bf16.mxu1 %v3344_v12  ;;  %v1284_v53 = vmax.f32 %v3947_v28, 0.0  ;;  %v1781_v28 = vld [vmem:[#allocation3 + $0x290] sm:$0xff] }
 0x129   : > { %v1316_v17 = vmax.f32 %v867_v13, 0.0  ;;  %2104 = vmatprep.mubr.f32.mxu1 %v1534_v47  ;;  %1252 = vmatprep.mubr.f32.mxu0 %v3343_v1  ;;  %v1479_v47 = vsub.s32 0, %v3924_v5  ;;  %v3068_v13 = vpack.c.bf16 %v1780_v23, %v1779_v18  ;;  %v1295_v23 = vmax.f32 %v3962_v56, 0.0  ;;  %v1787_v56 = vld [vmem:[#allocation3 + $0x2c0] sm:$0xff] }
 0x12a   : > { %2105 = vmatmul.mubr.f32.gmra.mrb[72].mxu1 %v1533_v8  ;;  %v1539_v11 = vsub.f32 %v1315_v59, %v3945_v51 }
 0x12b   : > { %v1540_v4 = vsub.f32 %v1316_v17, %v3942_v24  ;;  %v4002_v29 = vpop.f32.mrb[12].mxu0  ;;  %v871_v39 = vpop.f32.mrb[12].mxu1  ;;  %3057 = vmatpush1.bf16.msra.mxu1 %v3056_v55  ;;  %v4035_v55 = vrot.slane %v3935_v22, %v1483_v36 }
 0x12c   : > { %v1321_v14 = vmax.f32 %v871_v39, 0.0  ;;  %v4005_v45 = vpop.f32.mrb[13].mxu0  ;;  %v873_v16 = vpop.f32.mrb[13].mxu1  ;;  %2934 = vmatmul.mubr.msk.f32.gmra.mrb[118].mxu0 %vm415_vm0, %v3599_v49  ;;  %3058 = vmatprep.subr.bf16.mxu1 %v3344_v12  ;;  %v1782_v39 = vld [vmem:[#allocation3 + $0x298] sm:$0xff] }
 0x12d   : > { %v1322_v30 = vmax.f32 %v873_v16, 0.0  ;;  %2109 = vmatprep.mubr.f32.mxu1 %v1540_v4  ;;  %1258 = vmatprep.mubr.f32.mxu0 %v3343_v1  ;;  %v1508_v16 = vsub.f32 %v1284_v53, %v4035_v55  ;;  %v1514_v32 = vsub.f32 %v1290_v0, %v4035_v55  ;;  %v1308_v0 = vmax.f32 %v3985_v40, 0.0 }
 0x12e   : > { %2110 = vmatmul.mubr.f32.gmra.mrb[74].mxu1 %v1539_v11  ;;  %v1545_v27 = vsub.f32 %v1321_v14, %v3945_v51  ;;  %v1283_v11 = vmax.f32 %v3939_v10, 0.0  ;;  %v4049_v14 = vrot.slane %v3935_v22, %v1479_v47  ;;  %v1783_v22 = vld [vmem:[#allocation3 + $0x2a0] sm:$0xff]  ;;  %v1302_v47 = vmax.f32 %v3975_v35, 0.0 }
 0x12f   : > { %v1546_v6 = vsub.f32 %v1322_v30, %v3942_v24  ;;  %v4012_v20 = vpop.f32.mrb[14].mxu0  ;;  %v877_v21 = vpop.f32.mrb[14].mxu1  ;;  %3060 = vmatpush1.bf16.msra.mxu1 %v3059_v9 }
 0x130   : > { %v1327_v25 = vmax.f32 %v877_v21, 0.0  ;;  %v4015_v49 = vpop.f32.mrb[15].mxu0  ;;  %v879_v31 = vpop.f32.mrb[15].mxu1  ;;  %2935 = vmatmul.mubr.msk.f32.gmra.mrb[120].mxu0 %vm415_vm0, %v3602_v50  ;;  %3061 = vmatprep.subr.bf16.mxu1 %v3344_v12  ;;  %v1519_v35 = vsub.f32 %v1295_v23, %v4049_v14  ;;  %v1313_v23 = vmax.f32 %v3992_v52, 0.0  ;;  %v1793_v52 = vld [vmem:[#allocation3 + $0x2f0] sm:$0xff] }
 0x131   : > { %v1328_v34 = vmax.f32 %v879_v31, 0.0  ;;  %2114 = vmatprep.mubr.f32.mxu1 %v1546_v6  ;;  %1264 = vmatprep.mubr.f32.mxu0 %v3343_v1  ;;  %v3071_v6 = vpack.c.bf16 %v1782_v39, %v1781_v28  ;;  %v1289_v31 = vmax.f32 %v3953_v61, 0.0  ;;  %v1785_v61 = vld [vmem:[#allocation3 + $0x2b0] sm:$0xff]  ;;  %v1788_v39 = vld [vmem:[#allocation3 + $0x2c8] sm:$0xff] }
 0x132   : > { %2115 = vmatmul.mubr.f32.gmra.mrb[76].mxu1 %v1545_v27  ;;  %v1551_v50 = vsub.f32 %v1327_v25, %v3945_v51  ;;  %v1507_v25 = vsub.f32 %v1283_v11, %v4049_v14  ;;  %v1301_v11 = vmax.f32 %v3972_v26, 0.0  ;;  %v1789_v26 = vld [vmem:[#allocation3 + $0x2d0] sm:$0xff] }
 0x133   : > { %v1552_v41 = vsub.f32 %v1328_v34, %v3942_v24  ;;  %v4023_v37 = vpop.f32.mrb[16].mxu0  ;;  %v883_v48 = vpop.f32.mrb[16].mxu1  ;;  %3063 = vmatpush1.bf16.msra.mxu1 %v3062_v15  ;;  %v1513_v19 = vsub.f32 %v1289_v31, %v4049_v14  ;;  %v1307_v31 = vmax.f32 %v3982_v38, 0.0  ;;  %v1791_v38 = vld [vmem:[#allocation3 + $0x2e0] sm:$0xff] }
 0x134   : > { %v1333_v43 = vmax.f32 %v883_v48, 0.0  ;;  %v4026_v58 = vpop.f32.mrb[17].mxu0  ;;  %v885_v62 = vpop.f32.mrb[17].mxu1  ;;  %2936 = vmatmul.mubr.msk.f32.gmra.mrb[122].mxu0 %vm415_vm0, %v3607_v54  ;;  %3064 = vmatprep.subr.bf16.mxu1 %v3344_v12  ;;  %v1525_v40 = vsub.f32 %v1301_v11, %v4049_v14  ;;  %v1319_v11 = vmax.f32 %v4002_v29, 0.0 }
 0x135   : > { %v1334_v46 = vmax.f32 %v885_v62, 0.0  ;;  %2119 = vmatprep.mubr.f32.mxu1 %v1552_v41  ;;  %1270 = vmatprep.mubr.f32.mxu0 %v3343_v1  ;;  %v3074_v41 = vpack.c.bf16 %v1784_v3, %v1783_v22  ;;  %v1786_v62 = vld [vmem:[#allocation3 + $0x2b8] sm:$0xff] }
 0x136   : > { %2120 = vmatmul.mubr.f32.gmra.mrb[78].mxu1 %v1551_v50  ;;  %v1557_v63 = vsub.f32 %v1333_v43, %v3945_v51 }
 0x137   : > { %v1558_v8 = vsub.f32 %v1334_v46, %v3942_v24  ;;  %v4038_v59 = vpop.f32.mrb[18].mxu0  ;;  %v889_v54 = vpop.f32.mrb[18].mxu1  ;;  %3066 = vmatpush1.bf16.msra.mxu1 %v3065_v42  ;;  %v1520_v46 = vsub.f32 %v1296_v33, %v4035_v55  ;;  %v1314_v33 = vmax.f32 %v3995_v44, 0.0  ;;  %v1531_v44 = vsub.f32 %v1307_v31, %v4049_v14 }
 0x138   : > { %v1339_v2 = vmax.f32 %v889_v54, 0.0  ;;  %v4041_v17 = vpop.f32.mrb[19].mxu0  ;;  %v891_v4 = vpop.f32.mrb[19].mxu1  ;;  %2937 = vmatmul.mubr.msk.f32.gmra.mrb[124].mxu0 %vm415_vm0, %v3618_v57  ;;  %3067 = vmatprep.subr.bf16.mxu1 %v3344_v12  ;;  %v1332_v31 = vmax.f32 %v4026_v58, 0.0  ;;  %v1331_v58 = vmax.f32 %v4023_v37, 0.0 }
 0x139   : > { %v1340_v9 = vmax.f32 %v891_v4, 0.0  ;;  %2124 = vmatprep.mubr.f32.mxu1 %v1558_v8  ;;  %1276 = vmatprep.mubr.f32.mxu0 %v3343_v1 }
 0x13a   : > { %2125 = vmatmul.mubr.f32.gmra.mrb[80].mxu1 %v1557_v63  ;;  %v1563_v21 = vsub.f32 %v1339_v2, %v3945_v51  ;;  %v1555_v37 = vsub.f32 %v1331_v58, %v4049_v14 }
 0x13b   : > { %v1564_v57 = vsub.f32 %v1340_v9, %v3942_v24  ;;  %v4054_v7 = vpop.f32.mrb[20].mxu0  ;;  %v895_v30 = vpop.f32.mrb[20].mxu1  ;;  %3069 = vmatpush1.bf16.msra.mxu1 %v3068_v13  ;;  %v3077_v13 = vpack.c.bf16 %v1786_v62, %v1785_v61 }
 0x13c   : > { %v1345_v1 = vmax.f32 %v895_v30, 0.0  ;;  %v4057_v15 = vpop.f32.mrb[21].mxu0  ;;  %v897_v10 = vpop.f32.mrb[21].mxu1  ;;  %2938 = vmatmul.mubr.msk.f32.gmra.mrb[126].mxu0 %vm415_vm0, %v3625_v60  ;;  %3070 = vmatprep.subr.bf16.mxu1 %v3344_v12 }
 0x13d   : > { %v1346_v27 = vmax.f32 %v897_v10, 0.0  ;;  %1859 = vmatprep.mubr.f32.mxu0 %v1508_v16  ;;  %2129 = vmatprep.mubr.f32.mxu1 %v1564_v57  ;;  %v1526_v16 = vsub.f32 %v1302_v47, %v4035_v55  ;;  %v1320_v47 = vmax.f32 %v4005_v45, 0.0  ;;  %v1537_v45 = vsub.f32 %v1313_v23, %v4049_v14 }
 0x13e   : > { %2130 = vmatmul.mubr.f32.gmra.mrb[82].mxu1 %v1563_v21  ;;  %v1569_v48 = vsub.f32 %v1345_v1, %v3945_v51  ;;  %v3080_v21 = vpack.c.bf16 %v1788_v39, %v1787_v56 }
 0x13f   : > { %v1570_v34 = vsub.f32 %v1346_v27, %v3942_v24  ;;  %v4067_v36 = vpop.f32.mrb[22].mxu0  ;;  %v901_v60 = vpop.f32.mrb[22].mxu1  ;;  %3072 = vmatpush1.bf16.msra.mxu1 %v3071_v6  ;;  %v1790_v27 = vld [vmem:[#allocation3 + $0x2d8] sm:$0xff] }
 0x140   : > { %v1351_v42 = vmax.f32 %v901_v60, 0.0  ;;  %v4070_v50 = vpop.f32.mrb[23].mxu0  ;;  %v903_v43 = vpop.f32.mrb[23].mxu1  ;;  %1860 = vmatmul.mubr.f32.vlgmr.msra.gmra.mrb[128].mxu0 %v1507_v25  ;;  %3073 = vmatprep.subr.bf16.mxu1 %v3344_v12 }
 0x141   : > { %v1352_v18 = vmax.f32 %v903_v43, 0.0  ;;  %1864 = vmatprep.mubr.f32.mxu0 %v1514_v32  ;;  %2134 = vmatprep.mubr.f32.mxu1 %v1570_v34  ;;  %v1532_v32 = vsub.f32 %v1308_v0, %v4035_v55  ;;  %v1326_v0 = vmax.f32 %v4015_v49, 0.0  ;;  %v1543_v49 = vsub.f32 %v1319_v11, %v4049_v14 }
 0x142   : > { %2135 = vmatmul.mubr.f32.gmra.mrb[84].mxu1 %v1569_v48  ;;  %v1575_v63 = vsub.f32 %v1351_v42, %v3945_v51  ;;  %v3083_v48 = vpack.c.bf16 %v1790_v27, %v1789_v26 }
 0x143   : > { %v1576_v53 = vsub.f32 %v1352_v18, %v3942_v24  ;;  %v4078_v8 = vpop.f32.mrb[24].mxu0  ;;  %v907_v54 = vpop.f32.mrb[24].mxu1  ;;  %3075 = vmatpush1.bf16.msra.mxu1 %v3074_v41  ;;  %v1792_v18 = vld [vmem:[#allocation3 + $0x2e8] sm:$0xff] }
 0x144   : > { %v1357_v2 = vmax.f32 %v907_v54, 0.0  ;;  %v4081_v4 = vpop.f32.mrb[25].mxu0  ;;  %v909_v28 = vpop.f32.mrb[25].mxu1  ;;  %1865 = vmatmul.mubr.f32.gmra.mrb[130].mxu0 %v1513_v19  ;;  %3076 = vmatprep.subr.bf16.mxu1 %v3344_v12 }
 0x145   : > { %v1358_v9 = vmax.f32 %v909_v28, 0.0  ;;  %1869 = vmatprep.mubr.f32.mxu0 %v1520_v46  ;;  %2139 = vmatprep.mubr.f32.mxu1 %v1576_v53  ;;  %v1538_v46 = vsub.f32 %v1314_v33, %v4035_v55 }
 0x146   : > { %2140 = vmatmul.mubr.f32.gmra.mrb[86].mxu1 %v1575_v63  ;;  %v1581_v1 = vsub.f32 %v1357_v2, %v3945_v51  ;;  %v3086_v63 = vpack.c.bf16 %v1792_v18, %v1791_v38  ;;  %v1338_v38 = vmax.f32 %v4041_v17, 0.0 }
 0x147   : > { %v1582_v57 = vsub.f32 %v1358_v9, %v3942_v24  ;;  %v4089_v30 = vpop.f32.mrb[26].mxu0  ;;  %v913_v6 = vpop.f32.mrb[26].mxu1  ;;  %3078 = vmatpush1.bf16.msra.mxu1 %v3077_v13  ;;  %v1794_v9 = vld [vmem:[#allocation3 + $0x2f8] sm:$0xff] }
 0x148   : > { %v1363_v10 = vmax.f32 %v913_v6, 0.0  ;;  %v4092_v22 = vpop.f32.mrb[27].mxu0  ;;  %v915_v3 = vpop.f32.mrb[27].mxu1  ;;  %1870 = vmatmul.mubr.f32.gmra.mrb[132].mxu0 %v1519_v35  ;;  %3079 = vmatprep.subr.bf16.mxu1 %v3344_v12  ;;  %v1562_v17 = vsub.f32 %v1338_v38, %v4035_v55 }
 0x149   : > { %v1364_v25 = vmax.f32 %v915_v3, 0.0  ;;  %1874 = vmatprep.mubr.f32.mxu0 %v1526_v16  ;;  %2144 = vmatprep.mubr.f32.mxu1 %v1582_v57  ;;  %v1544_v16 = vsub.f32 %v1320_v47, %v4035_v55  ;;  %v1362_v38 = vmax.f32 %v4092_v22, 0.0 }
 0x14a   : > { %2145 = vmatmul.mubr.f32.gmra.mrb[88].mxu1 %v1581_v1  ;;  %v1587_v42 = vsub.f32 %v1363_v10, %v3945_v51  ;;  %v3089_v1 = vpack.c.bf16 %v1794_v9, %v1793_v52 }
 0x14b   : > { %v1588_v34 = vsub.f32 %v1364_v25, %v3942_v24  ;;  %v4100_v60 = vpop.f32.mrb[28].mxu0  ;;  %v919_v41 = vpop.f32.mrb[28].mxu1  ;;  %3081 = vmatpush1.bf16.msra.mxu1 %v3080_v21  ;;  %v1325_v25 = vmax.f32 %v4012_v20, 0.0  ;;  %v1586_v22 = vsub.f32 %v1362_v38, %v4035_v55 }
 0x14c   : > { %v1369_v43 = vmax.f32 %v919_v41, 0.0  ;;  %v4103_v61 = vpop.f32.mrb[29].mxu0  ;;  %v921_v62 = vpop.f32.mrb[29].mxu1  ;;  %1875 = vmatmul.mubr.f32.gmra.mrb[134].mxu0 %v1525_v40  ;;  %3082 = vmatprep.subr.bf16.mxu1 %v3344_v12  ;;  %v1550_v40 = vsub.f32 %v1326_v0, %v4035_v55  ;;  %v1343_v0 = vmax.f32 %v4054_v7, 0.0 }
 0x14d   : > { %v1370_v19 = vmax.f32 %v921_v62, 0.0  ;;  %1879 = vmatprep.mubr.f32.mxu0 %v1532_v32  ;;  %2149 = vmatprep.mubr.f32.mxu1 %v1588_v34  ;;  %v1549_v20 = vsub.f32 %v1325_v25, %v4049_v14  ;;  %v1556_v62 = vsub.f32 %v1332_v31, %v4035_v55  ;;  %v1356_v31 = vmax.f32 %v4081_v4, 0.0 }
 0x14e   : > { %2150 = vmatmul.mubr.f32.gmra.mrb[90].mxu1 %v1587_v42  ;;  %v1593_v2 = vsub.f32 %v1369_v43, %v3945_v51  ;;  %v1567_v7 = vsub.f32 %v1343_v0, %v4049_v14 }
 0x14f   : > { %v1594_v53 = vsub.f32 %v1370_v19, %v3942_v24  ;;  %v4111_v54 = vpop.f32.mrb[30].mxu0  ;;  %v925_v13 = vpop.f32.mrb[30].mxu1  ;;  %3084 = vmatpush1.bf16.msra.mxu1 %v3083_v48  ;;  %v1580_v4 = vsub.f32 %v1356_v31, %v4035_v55 }
 0x150   : > { %v1375_v28 = vmax.f32 %v925_v13, 0.0  ;;  %v4114_v56 = vpop.f32.mrb[31].mxu0  ;;  %v927_v39 = vpop.f32.mrb[31].mxu1  ;;  %1880 = vmatmul.mubr.f32.gmra.mrb[136].mxu0 %v1531_v44  ;;  %3085 = vmatprep.subr.bf16.mxu1 %v3344_v12 }
 0x151   : > { %v1376_v35 = vmax.f32 %v927_v39, 0.0  ;;  %1884 = vmatprep.mubr.f32.mxu0 %v1538_v46  ;;  %2154 = vmatprep.mubr.f32.mxu1 %v1594_v53 }
 0x152   : > { %2155 = vmatmul.mubr.f32.gmra.mrb[92].mxu1 %v1593_v2  ;;  %v1599_v10 = vsub.f32 %v1375_v28, %v3945_v51  ;;  %v1344_v2 = vmax.f32 %v4057_v15, 0.0 }
 0x153   : > { %v1600_v57 = vsub.f32 %v1376_v35, %v3942_v24  ;;  %v4122_v6 = vpop.f32.mrb[32].mxu0  ;;  %v931_v21 = vpop.f32.mrb[32].mxu1  ;;  %3087 = vmatpush1.bf16.msra.mxu1 %v3086_v63  ;;  %v1337_v63 = vmax.f32 %v4038_v59, 0.0 }
 0x154   : > { %v1381_v3 = vmax.f32 %v931_v21, 0.0  ;;  %v4125_v26 = vpop.f32.mrb[33].mxu0  ;;  %v933_v27 = vpop.f32.mrb[33].mxu1  ;;  %1885 = vmatmul.mubr.f32.gmra.mrb[138].mxu0 %v1537_v45  ;;  %3088 = vmatprep.subr.bf16.mxu1 %v3344_v12  ;;  %v1568_v15 = vsub.f32 %v1344_v2, %v4035_v55  ;;  %v1368_v2 = vmax.f32 %v4103_v61, 0.0 }
 0x155   : > { %v1382_v29 = vmax.f32 %v933_v27, 0.0  ;;  %1889 = vmatprep.mubr.f32.mxu0 %v1544_v16  ;;  %2159 = vmatprep.mubr.f32.mxu1 %v1600_v57  ;;  %v1561_v59 = vsub.f32 %v1337_v63, %v4049_v14  ;;  %v1350_v57 = vmax.f32 %v4070_v50, 0.0  ;;  %v1380_v31 = vmax.f32 %v4125_v26, 0.0 }
 0x156   : > { %2160 = vmatmul.mubr.f32.gmra.mrb[94].mxu1 %v1599_v10  ;;  %v1605_v12 = vsub.f32 %v1381_v3, %v3945_v51  ;;  %v1592_v61 = vsub.f32 %v1368_v2, %v4035_v55 }
 0x157   : > { %v1606_v32 = vsub.f32 %v1382_v29, %v3942_v24  ;;  %v4133_v33 = vpop.f32.mrb[34].mxu0  ;;  %v937_v34 = vpop.f32.mrb[34].mxu1  ;;  %3090 = vmatpush1.bf16.msra.mxu1 %v3089_v1  ;;  %v1574_v50 = vsub.f32 %v1350_v57, %v4035_v55  ;;  %v1374_v57 = vmax.f32 %v4114_v56, 0.0  ;;  %v1604_v26 = vsub.f32 %v1380_v31, %v4035_v55 }
 0x158   : > { %v1387_v41 = vmax.f32 %v937_v34, 0.0  ;;  %v4136_v48 = vpop.f32.mrb[35].mxu0  ;;  %v939_v42 = vpop.f32.mrb[35].mxu1  ;;  %1890 = vmatmul.mubr.f32.gmra.mrb[140].mxu0 %v1543_v49 }
 0x159   : > { %v1388_v43 = vmax.f32 %v939_v42, 0.0  ;;  %1894 = vmatprep.mubr.f32.mxu0 %v1550_v40  ;;  %2164 = vmatprep.mubr.f32.mxu1 %v1606_v32  ;;  %v1349_v40 = vmax.f32 %v4067_v36, 0.0  ;;  %v1598_v56 = vsub.f32 %v1374_v57, %v4035_v55  ;;  %v1386_v38 = vmax.f32 %v4136_v48, 0.0 }
 0x15a   : > { %2165 = vmatmul.mubr.f32.gmra.mrb[96].mxu1 %v1605_v12  ;;  %v1611_v23 = vsub.f32 %v1387_v41, %v3945_v51 }
 0x15b   : > { %v1612_v18 = vsub.f32 %v1388_v43, %v3942_v24  ;;  %v4143_v19 = vpop.f32.mrb[36].mxu0  ;;  %v943_v44 = vpop.f32.mrb[36].mxu1  ;;  %v1573_v36 = vsub.f32 %v1349_v40, %v4049_v14  ;;  %v1610_v48 = vsub.f32 %v1386_v38, %v4035_v55 }
 0x15c   : > { %v1393_v46 = vmax.f32 %v943_v44, 0.0  ;;  %v4146_v47 = vpop.f32.mrb[37].mxu0  ;;  %v945_v53 = vpop.f32.mrb[37].mxu1  ;;  %1895 = vmatmul.mubr.f32.gmra.mrb[142].mxu0 %v1549_v20 }
 0x15d   : > { %v1394_v13 = vmax.f32 %v945_v53, 0.0  ;;  %1899 = vmatprep.mubr.f32.mxu0 %v1556_v62  ;;  %2169 = vmatprep.mubr.f32.mxu1 %v1612_v18  ;;  %v1355_v62 = vmax.f32 %v4078_v8, 0.0  ;;  %v1392_v2 = vmax.f32 %v4146_v47, 0.0 }
 0x15e   : > { %2170 = vmatmul.mubr.f32.gmra.mrb[98].mxu1 %v1611_v23  ;;  %v1617_v9 = vsub.f32 %v1393_v46, %v3945_v51 }
 0x15f   : > { %v1618_v28 = vsub.f32 %v1394_v13, %v3942_v24  ;;  %v4153_v39 = vpop.f32.mrb[38].mxu0  ;;  %v949_v52 = vpop.f32.mrb[38].mxu1  ;;  %v1579_v8 = vsub.f32 %v1355_v62, %v4049_v14  ;;  %v1616_v47 = vsub.f32 %v1392_v2, %v4035_v55 }
 0x160   : > { %v1399_v35 = vmax.f32 %v949_v52, 0.0  ;;  %v4156_v45 = vpop.f32.mrb[39].mxu0  ;;  %v951_v11 = vpop.f32.mrb[39].mxu1  ;;  %1900 = vmatmul.mubr.f32.gmra.mrb[144].mxu0 %v1555_v37 }
 0x161   : > { %v1400_v16 = vmax.f32 %v951_v11, 0.0  ;;  %1904 = vmatprep.mubr.f32.mxu0 %v1562_v17  ;;  %2174 = vmatprep.mubr.f32.mxu1 %v1618_v28  ;;  %v1361_v17 = vmax.f32 %v4089_v30, 0.0  ;;  %v1398_v57 = vmax.f32 %v4156_v45, 0.0 }
 0x162   : > { %2175 = vmatmul.mubr.f32.gmra.mrb[100].mxu1 %v1617_v9  ;;  %v1623_v3 = vsub.f32 %v1399_v35, %v3945_v51 }
 0x163   : > { %v1624_v21 = vsub.f32 %v1400_v16, %v3942_v24  ;;  %v4163_v1 = vpop.f32.mrb[40].mxu0  ;;  %v955_v10 = vpop.f32.mrb[40].mxu1  ;;  %v1585_v30 = vsub.f32 %v1361_v17, %v4049_v14  ;;  %v1622_v45 = vsub.f32 %v1398_v57, %v4035_v55 }
 0x164   : > { %v1405_v27 = vmax.f32 %v955_v10, 0.0  ;;  %v4166_v29 = vpop.f32.mrb[41].mxu0  ;;  %v957_v49 = vpop.f32.mrb[41].mxu1  ;;  %1905 = vmatmul.mubr.f32.gmra.mrb[146].mxu0 %v1561_v59 }
 0x165   : > { %v1406_v25 = vmax.f32 %v957_v49, 0.0  ;;  %1909 = vmatprep.mubr.f32.mxu0 %v1568_v15  ;;  %2179 = vmatprep.mubr.f32.mxu1 %v1624_v21  ;;  %v1367_v15 = vmax.f32 %v4100_v60, 0.0  ;;  %v1404_v31 = vmax.f32 %v4166_v29, 0.0 }
 0x166   : > { %2180 = vmatmul.mubr.f32.gmra.mrb[102].mxu1 %v1623_v3  ;;  %v1629_v41 = vsub.f32 %v1405_v27, %v3945_v51 }
 0x167   : > { %v1630_v32 = vsub.f32 %v1406_v25, %v3942_v24  ;;  %v4173_v34 = vpop.f32.mrb[42].mxu0  ;;  %v961_v12 = vpop.f32.mrb[42].mxu1  ;;  %v1591_v60 = vsub.f32 %v1367_v15, %v4049_v14  ;;  %v1628_v29 = vsub.f32 %v1404_v31, %v4035_v55 }
 0x168   : > { %v1411_v42 = vmax.f32 %v961_v12, 0.0  ;;  %v4176_v43 = vpop.f32.mrb[43].mxu0  ;;  %v963_v20 = vpop.f32.mrb[43].mxu1  ;;  %1910 = vmatmul.mubr.f32.gmra.mrb[148].mxu0 %v1567_v7 }
 0x169   : > { %v1412_v58 = vmax.f32 %v963_v20, 0.0  ;;  %1914 = vmatprep.mubr.f32.mxu0 %v1574_v50  ;;  %2184 = vmatprep.mubr.f32.mxu1 %v1630_v32  ;;  %v1373_v50 = vmax.f32 %v4111_v54, 0.0  ;;  %v1410_v38 = vmax.f32 %v4176_v43, 0.0 }
 0x16a   : > { %2185 = vmatmul.mubr.f32.gmra.mrb[104].mxu1 %v1629_v41  ;;  %v1635_v46 = vsub.f32 %v1411_v42, %v3945_v51 }
 0x16b   : > { %v1636_v18 = vsub.f32 %v1412_v58, %v3942_v24  ;;  %v4183_v44 = vpop.f32.mrb[44].mxu0  ;;  %v967_v23 = vpop.f32.mrb[44].mxu1  ;;  %v1597_v54 = vsub.f32 %v1373_v50, %v4049_v14  ;;  %v1634_v43 = vsub.f32 %v1410_v38, %v4035_v55 }
 0x16c   : > { %v1417_v53 = vmax.f32 %v967_v23, 0.0  ;;  %v4186_v13 = vpop.f32.mrb[45].mxu0  ;;  %v969_v37 = vpop.f32.mrb[45].mxu1  ;;  %1915 = vmatmul.mubr.f32.gmra.mrb[150].mxu0 %v1573_v36  ;;  %v1415_v57 = vmax.f32 %v4183_v44, 0.0 }
 0x16d   : > { %v1418_v63 = vmax.f32 %v969_v37, 0.0  ;;  %1919 = vmatprep.mubr.f32.mxu0 %v1580_v4  ;;  %2189 = vmatprep.mubr.f32.mxu1 %v1636_v18  ;;  %v1379_v4 = vmax.f32 %v4122_v6, 0.0  ;;  %v1416_v2 = vmax.f32 %v4186_v13, 0.0 }
 0x16e   : > { %2190 = vmatmul.mubr.f32.gmra.mrb[106].mxu1 %v1635_v46  ;;  %v1641_v35 = vsub.f32 %v1417_v53, %v3945_v51 }
 0x16f   : > { %v1642_v28 = vsub.f32 %v1418_v63, %v3942_v24  ;;  %v4193_v52 = vpop.f32.mrb[46].mxu0  ;;  %v973_v9 = vpop.f32.mrb[46].mxu1  ;;  %v1603_v6 = vsub.f32 %v1379_v4, %v4049_v14 }
 0x170   : > { %v1423_v11 = vmax.f32 %v973_v9, 0.0  ;;  %v4196_v16 = vpop.f32.mrb[47].mxu0  ;;  %v975_v59 = vpop.f32.mrb[47].mxu1  ;;  %1920 = vmatmul.mubr.f32.gmra.mrb[152].mxu0 %v1579_v8 }
 0x171   : > { %v1424_v0 = vmax.f32 %v975_v59, 0.0  ;;  %1924 = vmatprep.mubr.f32.mxu0 %v1586_v22  ;;  %2194 = vmatprep.mubr.f32.mxu1 %v1642_v28  ;;  %v1385_v22 = vmax.f32 %v4133_v33, 0.0 }
 0x172   : > { %2195 = vmatmul.mubr.f32.gmra.mrb[108].mxu1 %v1641_v35  ;;  %v1647_v27 = vsub.f32 %v1423_v11, %v3945_v51 }
 0x173   : > { %v1648_v21 = vsub.f32 %v1424_v0, %v3942_v24  ;;  %v4203_v10 = vpop.f32.mrb[48].mxu0  ;;  %v979_v3 = vpop.f32.mrb[48].mxu1  ;;  %v1609_v33 = vsub.f32 %v1385_v22, %v4049_v14 }
 0x174   : > { %v1429_v49 = vmax.f32 %v979_v3, 0.0  ;;  %v4206_v25 = vpop.f32.mrb[49].mxu0  ;;  %v981_v7 = vpop.f32.mrb[49].mxu1  ;;  %1925 = vmatmul.mubr.f32.gmra.mrb[154].mxu0 %v1585_v30 }
 0x175   : > { %v1430_v40 = vmax.f32 %v981_v7, 0.0  ;;  %1929 = vmatprep.mubr.f32.mxu0 %v1592_v61  ;;  %2199 = vmatprep.mubr.f32.mxu1 %v1648_v21  ;;  %v1391_v61 = vmax.f32 %v4143_v19, 0.0 }
 0x176   : > { %2200 = vmatmul.mubr.f32.gmra.mrb[110].mxu1 %v1647_v27  ;;  %v1653_v42 = vsub.f32 %v1429_v49, %v3945_v51 }
 0x177   : > { %v1654_v32 = vsub.f32 %v1430_v40, %v3942_v24  ;;  %v4213_v12 = vpop.f32.mrb[50].mxu0  ;;  %v985_v41 = vpop.f32.mrb[50].mxu1  ;;  %v1615_v19 = vsub.f32 %v1391_v61, %v4049_v14 }
 0x178   : > { %v1435_v20 = vmax.f32 %v985_v41, 0.0  ;;  %v4216_v58 = vpop.f32.mrb[51].mxu0  ;;  %v987_v36 = vpop.f32.mrb[51].mxu1  ;;  %1930 = vmatmul.mubr.f32.gmra.mrb[156].mxu0 %v1591_v60 }
 0x179   : > { %v1436_v62 = vmax.f32 %v987_v36, 0.0  ;;  %1934 = vmatprep.mubr.f32.mxu0 %v1598_v56  ;;  %2204 = vmatprep.mubr.f32.mxu1 %v1654_v32  ;;  %v1397_v56 = vmax.f32 %v4153_v39, 0.0 }
 0x17a   : > { %2205 = vmatmul.mubr.f32.gmra.mrb[112].mxu1 %v1653_v42  ;;  %v1659_v53 = vsub.f32 %v1435_v20, %v3945_v51 }
 0x17b   : > { %v1660_v18 = vsub.f32 %v1436_v62, %v3942_v24  ;;  %v4223_v23 = vpop.f32.mrb[52].mxu0  ;;  %v991_v46 = vpop.f32.mrb[52].mxu1  ;;  %v1621_v39 = vsub.f32 %v1397_v56, %v4049_v14 }
 0x17c   : > { %v1441_v37 = vmax.f32 %v991_v46, 0.0  ;;  %v4226_v63 = vpop.f32.mrb[53].mxu0  ;;  %v993_v8 = vpop.f32.mrb[53].mxu1  ;;  %1935 = vmatmul.mubr.f32.gmra.mrb[158].mxu0 %v1597_v54 }
 0x17d   : > { %v1442_v17 = vmax.f32 %v993_v8, 0.0  ;;  %1939 = vmatprep.mubr.f32.mxu0 %v1604_v26  ;;  %2209 = vmatprep.mubr.f32.mxu1 %v1660_v18  ;;  %v1403_v26 = vmax.f32 %v4163_v1, 0.0 }
 0x17e   : > { %2210 = vmatmul.mubr.f32.gmra.mrb[114].mxu1 %v1659_v53  ;;  %v1665_v11 = vsub.f32 %v1441_v37, %v3945_v51 }
 0x17f   : > { %v1666_v28 = vsub.f32 %v1442_v17, %v3942_v24  ;;  %v4233_v9 = vpop.f32.mrb[54].mxu0  ;;  %v997_v35 = vpop.f32.mrb[54].mxu1  ;;  %v1627_v1 = vsub.f32 %v1403_v26, %v4049_v14 }
 0x180   : > { %v1447_v59 = vmax.f32 %v997_v35, 0.0  ;;  %v4236_v0 = vpop.f32.mrb[55].mxu0  ;;  %v999_v30 = vpop.f32.mrb[55].mxu1  ;;  %1940 = vmatmul.mubr.f32.gmra.mrb[160].mxu0 %v1603_v6 }
 0x181   : > { %v1448_v15 = vmax.f32 %v999_v30, 0.0  ;;  %1944 = vmatprep.mubr.f32.mxu0 %v1610_v48  ;;  %2214 = vmatprep.mubr.f32.mxu1 %v1666_v28  ;;  %v1409_v48 = vmax.f32 %v4173_v34, 0.0  ;;  %v1495_v34 = vsub.s32 4, %v3924_v5 }
 0x182   : > { %2215 = vmatmul.mubr.f32.gmra.mrb[116].mxu1 %v1665_v11  ;;  %v1671_v49 = vsub.f32 %v1447_v59, %v3945_v51  ;;  %v1499_v59 = vsub.s32 5, %v3924_v5 }
 0x183   : > { %v1672_v21 = vsub.f32 %v1448_v15, %v3942_v24  ;;  %v4243_v3 = vpop.f32.mrb[56].mxu0  ;;  %v1003_v27 = vpop.f32.mrb[56].mxu1  ;;  %v1633_v13 = vsub.f32 %v1409_v48, %v4049_v14 }
 0x184   : > { %v1453_v7 = vmax.f32 %v1003_v27, 0.0  ;;  %v4246_v40 = vpop.f32.mrb[57].mxu0  ;;  %v1005_v60 = vpop.f32.mrb[57].mxu1  ;;  %1945 = vmatmul.mubr.f32.gmra.mrb[162].mxu0 %v1609_v33  ;;  %v1422_v27 = vmax.f32 %v4196_v16, 0.0  ;;  %v1639_v16 = vsub.f32 %v1415_v57, %v4049_v14 }
 0x185   : > { %v1454_v50 = vmax.f32 %v1005_v60, 0.0  ;;  %1949 = vmatprep.mubr.f32.mxu0 %v1616_v47  ;;  %2219 = vmatprep.mubr.f32.mxu1 %v1672_v21  ;;  %v1640_v21 = vsub.f32 %v1416_v2, %v4035_v55  ;;  %v3243_v60 = vld [vmem:[%s4714_s3] sm:$0x3f] }
 0x186   : > { %2220 = vmatmul.mubr.f32.gmra.mrb[118].mxu1 %v1671_v49  ;;  %v1677_v20 = vsub.f32 %v1453_v7, %v3945_v51  ;;  %v4288_v5 = vrot.slane %v3243_v60, %v1499_v59  ;;  %v4291_v56 = vrot.slane %v3243_v60, %v1495_v34  ;;  %v1646_v31 = vsub.f32 %v1422_v27, %v4035_v55 }
 0x187   : > { %v1678_v32 = vsub.f32 %v1454_v50, %v3942_v24  ;;  %v4253_v41 = vpop.f32.mrb[58].mxu0  ;;  %v1009_v42 = vpop.f32.mrb[58].mxu1 }
 0x188   : > { %v1459_v36 = vmax.f32 %v1009_v42, 0.0  ;;  %v4256_v62 = vpop.f32.mrb[59].mxu0  ;;  %v1011_v54 = vpop.f32.mrb[59].mxu1  ;;  %1950 = vmatmul.mubr.f32.gmra.mrb[164].mxu0 %v1615_v19 }
 0x189   : > { %v1460_v4 = vmax.f32 %v1011_v54, 0.0  ;;  %1954 = vmatprep.mubr.f32.mxu0 %v1622_v45  ;;  %2224 = vmatprep.mubr.f32.mxu1 %v1678_v32  ;;  %v1428_v32 = vmax.f32 %v4206_v25, 0.0  ;;  %v1434_v25 = vmax.f32 %v4216_v58, 0.0  ;;  %v1440_v58 = vmax.f32 %v4226_v63, 0.0 }
 0x18a   : > { %2225 = vmatmul.mubr.f32.gmra.mrb[120].mxu1 %v1677_v20  ;;  %v1683_v37 = vsub.f32 %v1459_v36, %v3945_v51  ;;  %v1446_v63 = vmax.f32 %v4236_v0, 0.0  ;;  %v1452_v0 = vmax.f32 %v4246_v40, 0.0  ;;  %v1458_v40 = vmax.f32 %v4256_v62, 0.0 }
 0x18b   : > { %v1684_v18 = vsub.f32 %v1460_v4, %v3942_v24  ;;  %v4263_v46 = vpop.f32.mrb[60].mxu0  ;;  %v1015_v53 = vpop.f32.mrb[60].mxu1  ;;  %v1652_v26 = vsub.f32 %v1428_v32, %v4035_v55 }
 0x18c   : > { %v1465_v8 = vmax.f32 %v1015_v53, 0.0  ;;  %v4266_v17 = vpop.f32.mrb[61].mxu0  ;;  %v1017_v6 = vpop.f32.mrb[61].mxu1  ;;  %1955 = vmatmul.mubr.f32.gmra.mrb[166].mxu0 %v1621_v39  ;;  %v1670_v27 = vsub.f32 %v1446_v63, %v4035_v55 }
 0x18d   : > { %v1466_v22 = vmax.f32 %v1017_v6, 0.0  ;;  %1959 = vmatprep.mubr.f32.mxu0 %v1628_v29  ;;  %2229 = vmatprep.mubr.f32.mxu1 %v1684_v18  ;;  %v1464_v62 = vmax.f32 %v4266_v17, 0.0 }
 0x18e   : > { %2230 = vmatmul.mubr.f32.gmra.mrb[122].mxu1 %v1683_v37  ;;  %v1689_v30 = vsub.f32 %v1465_v8, %v3945_v51 }
 0x18f   : > { %v1690_v28 = vsub.f32 %v1466_v22, %v3942_v24  ;;  %v4273_v35 = vpop.f32.mrb[62].mxu0  ;;  %v1021_v11 = vpop.f32.mrb[62].mxu1  ;;  %v1658_v22 = vsub.f32 %v1434_v25, %v4035_v55 }
 0x190   : > { %v1471_v15 = vmax.f32 %v1021_v11, 0.0  ;;  %v4277_v33 = vpop.f32.mrb[63].mxu0  ;;  %v1023_v61 = vpop.f32.mrb[63].mxu1  ;;  %1960 = vmatmul.mubr.f32.gmra.mrb[168].mxu0 %v1627_v1 }
 0x191   : > { %v1472_v47 = vmax.f32 %v1023_v61, 0.0  ;;  %1964 = vmatprep.mubr.f32.mxu0 %v1634_v43  ;;  %2234 = vmatprep.mubr.f32.mxu1 %v1690_v28  ;;  %v1470_v17 = vmax.f32 %v4277_v33, 0.0 }
 0x192   : > { %2235 = vmatmul.mubr.f32.gmra.mrb[124].mxu1 %v1689_v30  ;;  %v1695_v50 = vsub.f32 %v1471_v15, %v3945_v51  ;;  %v1664_v30 = vsub.f32 %v1440_v58, %v4035_v55 }
 0x193   : > { %v1696_v49 = vsub.f32 %v1472_v47, %v3942_v24  ;;  %v1092_v7 = vpop.f32.mrb[64].mxu0  ;;  %v1421_v24 = vmax.f32 %v4193_v52, 0.0  ;;  %v1427_v52 = vmax.f32 %v4203_v10, 0.0  ;;  %v1433_v10 = vmax.f32 %v4213_v12, 0.0 }
 0x194   : > { %v1287_v19 = vmax.f32 %v1092_v7, 0.0  ;;  %v1094_v44 = vpop.f32.mrb[65].mxu0  ;;  %1965 = vmatmul.mubr.f32.gmra.mrb[170].mxu0 %v1633_v13  ;;  %v1439_v12 = vmax.f32 %v4223_v23, 0.0  ;;  %v1445_v23 = vmax.f32 %v4233_v9, 0.0  ;;  %v1451_v9 = vmax.f32 %v4243_v3, 0.0 }
 0x195   : > { %v1288_v45 = vmax.f32 %v1094_v44, 0.0  ;;  %1969 = vmatprep.mubr.f32.mxu0 %v1640_v21  ;;  %2239 = vmatprep.mubr.f32.mxu1 %v1696_v49  ;;  %v1645_v39 = vsub.f32 %v1421_v24, %v4049_v14  ;;  %v1651_v6 = vsub.f32 %v1427_v52, %v4049_v14  ;;  %v1657_v59 = vsub.f32 %v1433_v10, %v4049_v14 }
 0x196   : > { %2240 = vmatmul.mubr.f32.gmra.mrb[126].mxu1 %v1695_v50  ;;  %v1511_v20 = vsub.f32 %v1287_v19, %v4291_v56  ;;  %v1663_v21 = vsub.f32 %v1439_v12, %v4049_v14  ;;  %v1457_v3 = vmax.f32 %v4253_v41, 0.0  ;;  %v1463_v41 = vmax.f32 %v4263_v46, 0.0 }
 0x197   : > { %v1512_v42 = vsub.f32 %v1288_v45, %v4288_v5  ;;  %v1098_v51 = vpop.f32.mrb[66].mxu0  ;;  %v1669_v45 = vsub.f32 %v1445_v23, %v4049_v14  ;;  %v1469_v46 = vmax.f32 %v4273_v35, 0.0 }
 0x198   : > { %v1293_v36 = vmax.f32 %v1098_v51, 0.0  ;;  %v1100_v54 = vpop.f32.mrb[67].mxu0  ;;  %1970 = vmatmul.mubr.f32.gmra.mrb[172].mxu0 %v1639_v16  ;;  %v1676_v16 = vsub.f32 %v1452_v0, %v4035_v55  ;;  %v1687_v58 = vsub.f32 %v1463_v41, %v4049_v14 }
 0x199   : > { %v1294_v4 = vmax.f32 %v1100_v54, 0.0  ;;  %1974 = vmatprep.mubr.f32.mxu0 %v1646_v31  ;;  %2309 = vmatprep.mubr.f32.mxu1 %v1512_v42  ;;  %v1682_v54 = vsub.f32 %v1458_v40, %v4035_v55 }
 0x19a   : > { %2310 = vmatmul.mubr.f32.vlgmr.msra.gmra.mrb[64].mxu1 %v1511_v20  ;;  %v1517_v18 = vsub.f32 %v1293_v36, %v4291_v56  ;;  %v1675_v36 = vsub.f32 %v1451_v9, %v4049_v14 }
 0x19b   : > { %v1518_v29 = vsub.f32 %v1294_v4, %v4288_v5  ;;  %v1104_v38 = vpop.f32.mrb[68].mxu0 }
 0x19c   : > { %v1299_v53 = vmax.f32 %v1104_v38, 0.0  ;;  %v1106_v37 = vpop.f32.mrb[69].mxu0  ;;  %1975 = vmatmul.mubr.f32.gmra.mrb[174].mxu0 %v1645_v39  ;;  %v1681_v38 = vsub.f32 %v1457_v3, %v4049_v14 }
 0x19d   : > { %v1300_v8 = vmax.f32 %v1106_v37, 0.0  ;;  %1979 = vmatprep.mubr.f32.mxu0 %v1652_v26  ;;  %2314 = vmatprep.mubr.f32.mxu1 %v1518_v29 }
 0x19e   : > { %2315 = vmatmul.mubr.f32.gmra.mrb[66].mxu1 %v1517_v18  ;;  %v1523_v43 = vsub.f32 %v1299_v53, %v4291_v56  ;;  %v1688_v18 = vsub.f32 %v1464_v62, %v4035_v55 }
 0x19f   : > { %v1524_v1 = vsub.f32 %v1300_v8, %v4288_v5  ;;  %v1110_v48 = vpop.f32.mrb[70].mxu0 }
 0x1a0   : > { %v1305_v2 = vmax.f32 %v1110_v48, 0.0  ;;  %v1112_v28 = vpop.f32.mrb[71].mxu0  ;;  %1980 = vmatmul.mubr.f32.gmra.mrb[176].mxu0 %v1651_v6 }
 0x1a1   : > { %v1306_v11 = vmax.f32 %v1112_v28, 0.0  ;;  %1984 = vmatprep.mubr.f32.mxu0 %v1658_v22  ;;  %2319 = vmatprep.mubr.f32.mxu1 %v1524_v1  ;;  %v1694_v1 = vsub.f32 %v1470_v17, %v4035_v55 }
 0x1a2   : > { %2320 = vmatmul.mubr.f32.gmra.mrb[68].mxu1 %v1523_v43  ;;  %v1529_v34 = vsub.f32 %v1305_v2, %v4291_v56 }
 0x1a3   : > { %v1530_v15 = vsub.f32 %v1306_v11, %v4288_v5  ;;  %v1116_v61 = vpop.f32.mrb[72].mxu0 }
 0x1a4   : > { %v1311_v47 = vmax.f32 %v1116_v61, 0.0  ;;  %v1118_v13 = vpop.f32.mrb[73].mxu0  ;;  %1985 = vmatmul.mubr.f32.gmra.mrb[178].mxu0 %v1657_v59  ;;  %v1693_v59 = vsub.f32 %v1469_v46, %v4049_v14 }
 0x1a5   : > { %v1312_v57 = vmax.f32 %v1118_v13, 0.0  ;;  %1989 = vmatprep.mubr.f32.mxu0 %v1664_v30  ;;  %2324 = vmatprep.mubr.f32.mxu1 %v1530_v15 }
 0x1a6   : > { %2325 = vmatmul.mubr.f32.gmra.mrb[70].mxu1 %v1529_v34  ;;  %v1535_v60 = vsub.f32 %v1311_v47, %v4291_v56 }
 0x1a7   : > { %v1536_v49 = vsub.f32 %v1312_v57, %v4288_v5  ;;  %v1122_v7 = vpop.f32.mrb[74].mxu0 }
 0x1a8   : > { %v1317_v50 = vmax.f32 %v1122_v7, 0.0  ;;  %v1124_v19 = vpop.f32.mrb[75].mxu0  ;;  %1990 = vmatmul.mubr.f32.gmra.mrb[180].mxu0 %v1663_v21 }
 0x1a9   : > { %v1318_v44 = vmax.f32 %v1124_v19, 0.0  ;;  %1994 = vmatprep.mubr.f32.mxu0 %v1670_v27  ;;  %2329 = vmatprep.mubr.f32.mxu1 %v1536_v49 }
 0x1aa   : > { %2330 = vmatmul.mubr.f32.gmra.mrb[72].mxu1 %v1535_v60  ;;  %v1541_v32 = vsub.f32 %v1317_v50, %v4291_v56 }
 0x1ab   : > { %v1542_v24 = vsub.f32 %v1318_v44, %v4288_v5  ;;  %v1128_v31 = vpop.f32.mrb[76].mxu0 }
 0x1ac   : > { %v1323_v42 = vmax.f32 %v1128_v31, 0.0  ;;  %v1130_v51 = vpop.f32.mrb[77].mxu0  ;;  %1995 = vmatmul.mubr.f32.gmra.mrb[182].mxu0 %v1669_v45 }
 0x1ad   : > { %v1324_v20 = vmax.f32 %v1130_v51, 0.0  ;;  %1999 = vmatprep.mubr.f32.mxu0 %v1676_v16  ;;  %2334 = vmatprep.mubr.f32.mxu1 %v1542_v24 }
 0x1ae   : > { %2335 = vmatmul.mubr.f32.gmra.mrb[74].mxu1 %v1541_v32  ;;  %v1547_v52 = vsub.f32 %v1323_v42, %v4291_v56 }
 0x1af   : > { %v1548_v4 = vsub.f32 %v1324_v20, %v4288_v5  ;;  %v1134_v39 = vpop.f32.mrb[78].mxu0 }
 0x1b0   : > { %v1329_v26 = vmax.f32 %v1134_v39, 0.0  ;;  %v1136_v25 = vpop.f32.mrb[79].mxu0  ;;  %2000 = vmatmul.mubr.f32.gmra.mrb[184].mxu0 %v1675_v36 }
 0x1b1   : > { %v1330_v29 = vmax.f32 %v1136_v25, 0.0  ;;  %2004 = vmatprep.mubr.f32.mxu0 %v1682_v54  ;;  %2339 = vmatprep.mubr.f32.mxu1 %v1548_v4 }
 0x1b2   : > { %2340 = vmatmul.mubr.f32.gmra.mrb[76].mxu1 %v1547_v52  ;;  %v1553_v8 = vsub.f32 %v1329_v26, %v4291_v56 }
 0x1b3   : > { %v1554_v53 = vsub.f32 %v1330_v29, %v4288_v5  ;;  %v1140_v37 = vpop.f32.mrb[80].mxu0 }
 0x1b4   : > { %v1335_v6 = vmax.f32 %v1140_v37, 0.0  ;;  %v1142_v10 = vpop.f32.mrb[81].mxu0  ;;  %2005 = vmatmul.mubr.f32.gmra.mrb[186].mxu0 %v1681_v38 }
 0x1b5   : > { %v1336_v22 = vmax.f32 %v1142_v10, 0.0  ;;  %2009 = vmatprep.mubr.f32.mxu0 %v1688_v18  ;;  %2344 = vmatprep.mubr.f32.mxu1 %v1554_v53 }
 0x1b6   : > { %2345 = vmatmul.mubr.f32.gmra.mrb[78].mxu1 %v1553_v8  ;;  %v1559_v43 = vsub.f32 %v1335_v6, %v4291_v56 }
 0x1b7   : > { %v1560_v33 = vsub.f32 %v1336_v22, %v4288_v5  ;;  %v1146_v48 = vpop.f32.mrb[82].mxu0 }
 0x1b8   : > { %v1341_v2 = vmax.f32 %v1146_v48, 0.0  ;;  %v1148_v28 = vpop.f32.mrb[83].mxu0  ;;  %2010 = vmatmul.mubr.f32.gmra.mrb[188].mxu0 %v1687_v58 }
 0x1b9   : > { %v1342_v11 = vmax.f32 %v1148_v28, 0.0  ;;  %2014 = vmatprep.mubr.f32.mxu0 %v1694_v1  ;;  %2349 = vmatprep.mubr.f32.mxu1 %v1560_v33 }
 0x1ba   : > { %2350 = vmatmul.mubr.f32.gmra.mrb[80].mxu1 %v1559_v43  ;;  %v1565_v30 = vsub.f32 %v1341_v2, %v4291_v56 }
 0x1bb   : > { %v1566_v12 = vsub.f32 %v1342_v11, %v4288_v5  ;;  %v1152_v35 = vpop.f32.mrb[84].mxu0 }
 0x1bc   : > { %v1347_v55 = vmax.f32 %v1152_v35, 0.0  ;;  %v1154_v63 = vpop.f32.mrb[85].mxu0  ;;  %2015 = vmatmul.mubr.f32.gmra.mrb[190].mxu0 %v1693_v59 }
 0x1bd   : > { %v1348_v15 = vmax.f32 %v1154_v63, 0.0  ;;  %2354 = vmatprep.mubr.f32.mxu1 %v1566_v12 }
 0x1be   : > { %2355 = vmatmul.mubr.f32.gmra.mrb[82].mxu1 %v1565_v30  ;;  %v1571_v47 = vsub.f32 %v1347_v55, %v4291_v56 }
 0x1bf   : > { %v1572_v61 = vsub.f32 %v1348_v15, %v4288_v5  ;;  %v1158_v34 = vpop.f32.mrb[86].mxu0 }
 0x1c0   : > { %v1353_v13 = vmax.f32 %v1158_v34, 0.0  ;;  %v1160_v57 = vpop.f32.mrb[87].mxu0 }
 0x1c1   : > { %v1354_v14 = vmax.f32 %v1160_v57, 0.0  ;;  %2359 = vmatprep.mubr.f32.mxu1 %v1572_v61 }
 0x1c2   : > { %2360 = vmatmul.mubr.f32.gmra.mrb[84].mxu1 %v1571_v47  ;;  %v1577_v27 = vsub.f32 %v1353_v13, %v4291_v56 }
 0x1c3   : > { %v1578_v21 = vsub.f32 %v1354_v14, %v4288_v5  ;;  %v1164_v23 = vpop.f32.mrb[88].mxu0 }
 0x1c4   : > { %v1359_v0 = vmax.f32 %v1164_v23, 0.0  ;;  %v1166_v49 = vpop.f32.mrb[89].mxu0 }
 0x1c5   : > { %v1360_v7 = vmax.f32 %v1166_v49, 0.0  ;;  %2364 = vmatprep.mubr.f32.mxu1 %v1578_v21 }
 0x1c6   : > { %2365 = vmatmul.mubr.f32.gmra.mrb[86].mxu1 %v1577_v27  ;;  %v1583_v19 = vsub.f32 %v1359_v0, %v4291_v56 }
 0x1c7   : > { %v1584_v60 = vsub.f32 %v1360_v7, %v4288_v5  ;;  %v1170_v50 = vpop.f32.mrb[90].mxu0 }
 0x1c8   : > { %v1365_v44 = vmax.f32 %v1170_v50, 0.0  ;;  %v1172_v45 = vpop.f32.mrb[91].mxu0 }
 0x1c9   : > { %v1366_v9 = vmax.f32 %v1172_v45, 0.0  ;;  %2369 = vmatprep.mubr.f32.mxu1 %v1584_v60 }
 0x1ca   : > { %2370 = vmatmul.mubr.f32.gmra.mrb[88].mxu1 %v1583_v19  ;;  %v1589_v24 = vsub.f32 %v1365_v44, %v4291_v56 }
 0x1cb   : > { %v1590_v16 = vsub.f32 %v1366_v9, %v4288_v5  ;;  %v1176_v40 = vpop.f32.mrb[92].mxu0 }
 0x1cc   : > { %v1371_v31 = vmax.f32 %v1176_v40, 0.0  ;;  %v1178_v32 = vpop.f32.mrb[93].mxu0 }
 0x1cd   : > { %v1372_v42 = vmax.f32 %v1178_v32, 0.0  ;;  %2374 = vmatprep.mubr.f32.mxu1 %v1590_v16 }
 0x1ce   : > { %2375 = vmatmul.mubr.f32.gmra.mrb[90].mxu1 %v1589_v24  ;;  %v1595_v36 = vsub.f32 %v1371_v31, %v4291_v56 }
 0x1cf   : > { %v1596_v51 = vsub.f32 %v1372_v42, %v4288_v5  ;;  %v1182_v20 = vpop.f32.mrb[94].mxu0 }
 0x1d0   : > { %v1377_v3 = vmax.f32 %v1182_v20, 0.0  ;;  %v1184_v54 = vpop.f32.mrb[95].mxu0 }
 0x1d1   : > { %v1378_v62 = vmax.f32 %v1184_v54, 0.0  ;;  %2379 = vmatprep.mubr.f32.mxu1 %v1596_v51 }
 0x1d2   : > { %2380 = vmatmul.mubr.f32.gmra.mrb[92].mxu1 %v1595_v36  ;;  %v1601_v52 = vsub.f32 %v1377_v3, %v4291_v56 }
 0x1d3   : > { %v1602_v4 = vsub.f32 %v1378_v62, %v4288_v5  ;;  %v1188_v39 = vpop.f32.mrb[96].mxu0 }
 0x1d4   : > { %v1383_v26 = vmax.f32 %v1188_v39, 0.0  ;;  %v1190_v25 = vpop.f32.mrb[97].mxu0 }
 0x1d5   : > { %v1384_v29 = vmax.f32 %v1190_v25, 0.0  ;;  %2384 = vmatprep.mubr.f32.mxu1 %v1602_v4 }
 0x1d6   : > { %2385 = vmatmul.mubr.f32.gmra.mrb[94].mxu1 %v1601_v52  ;;  %v1607_v18 = vsub.f32 %v1383_v26, %v4291_v56 }
 0x1d7   : > { %v1608_v38 = vsub.f32 %v1384_v29, %v4288_v5  ;;  %v1194_v41 = vpop.f32.mrb[98].mxu0 }
 0x1d8   : > { %v1389_v17 = vmax.f32 %v1194_v41, 0.0  ;;  %v1196_v53 = vpop.f32.mrb[99].mxu0 }
 0x1d9   : > { %v1390_v37 = vmax.f32 %v1196_v53, 0.0  ;;  %2389 = vmatprep.mubr.f32.mxu1 %v1608_v38 }
 0x1da   : > { %2390 = vmatmul.mubr.f32.gmra.mrb[96].mxu1 %v1607_v18  ;;  %v1613_v10 = vsub.f32 %v1389_v17, %v4291_v56 }
 0x1db   : > { %v1614_v8 = vsub.f32 %v1390_v37, %v4288_v5  ;;  %v1200_v6 = vpop.f32.mrb[100].mxu0 }
 0x1dc   : > { %v1395_v22 = vmax.f32 %v1200_v6, 0.0  ;;  %v1202_v58 = vpop.f32.mrb[101].mxu0 }
 0x1dd   : > { %v1396_v46 = vmax.f32 %v1202_v58, 0.0  ;;  %2394 = vmatprep.mubr.f32.mxu1 %v1614_v8 }
 0x1de   : > { %2395 = vmatmul.mubr.f32.gmra.mrb[98].mxu1 %v1613_v10  ;;  %v1619_v48 = vsub.f32 %v1395_v22, %v4291_v56 }
 0x1df   : > { %v1620_v1 = vsub.f32 %v1396_v46, %v4288_v5  ;;  %v1206_v33 = vpop.f32.mrb[102].mxu0 }
 0x1e0   : > { %v1401_v43 = vmax.f32 %v1206_v33, 0.0  ;;  %v1208_v2 = vpop.f32.mrb[103].mxu0 }
 0x1e1   : > { %v1402_v28 = vmax.f32 %v1208_v2, 0.0  ;;  %2399 = vmatprep.mubr.f32.mxu1 %v1620_v1 }
 0x1e2   : > { %2400 = vmatmul.mubr.f32.gmra.mrb[100].mxu1 %v1619_v48  ;;  %v1625_v12 = vsub.f32 %v1401_v43, %v4291_v56 }
 0x1e3   : > { %v1626_v11 = vsub.f32 %v1402_v28, %v4288_v5  ;;  %v1212_v59 = vpop.f32.mrb[104].mxu0 }
 0x1e4   : > { %v1407_v35 = vmax.f32 %v1212_v59, 0.0  ;;  %v1214_v30 = vpop.f32.mrb[105].mxu0 }
 0x1e5   : > { %v1408_v55 = vmax.f32 %v1214_v30, 0.0  ;;  %2404 = vmatprep.mubr.f32.mxu1 %v1626_v11 }
 0x1e6   : > { %2405 = vmatmul.mubr.f32.gmra.mrb[102].mxu1 %v1625_v12  ;;  %v1631_v61 = vsub.f32 %v1407_v35, %v4291_v56 }
 0x1e7   : > { %v1632_v63 = vsub.f32 %v1408_v55, %v4288_v5  ;;  %v1218_v15 = vpop.f32.mrb[106].mxu0 }
 0x1e8   : > { %v1413_v34 = vmax.f32 %v1218_v15, 0.0  ;;  %v1220_v47 = vpop.f32.mrb[107].mxu0 }
 0x1e9   : > { %v1414_v13 = vmax.f32 %v1220_v47, 0.0  ;;  %2409 = vmatprep.mubr.f32.mxu1 %v1632_v63 }
 0x1ea   : > { %2410 = vmatmul.mubr.f32.gmra.mrb[104].mxu1 %v1631_v61  ;;  %v1637_v21 = vsub.f32 %v1413_v34, %v4291_v56 }
 0x1eb   : > { %v1638_v57 = vsub.f32 %v1414_v13, %v4288_v5  ;;  %v1224_v14 = vpop.f32.mrb[108].mxu0 }
 0x1ec   : > { %v1419_v23 = vmax.f32 %v1224_v14, 0.0  ;;  %v1226_v27 = vpop.f32.mrb[109].mxu0 }
 0x1ed   : > { %v1420_v0 = vmax.f32 %v1226_v27, 0.0  ;;  %2414 = vmatprep.mubr.f32.mxu1 %v1638_v57 }
 0x1ee   : > { %2415 = vmatmul.mubr.f32.gmra.mrb[106].mxu1 %v1637_v21  ;;  %v1643_v60 = vsub.f32 %v1419_v23, %v4291_v56 }
 0x1ef   : > { %v1644_v49 = vsub.f32 %v1420_v0, %v4288_v5  ;;  %v1230_v7 = vpop.f32.mrb[110].mxu0 }
 0x1f0   : > { %v1425_v50 = vmax.f32 %v1230_v7, 0.0  ;;  %v1232_v19 = vpop.f32.mrb[111].mxu0 }
 0x1f1   : > { %v1426_v44 = vmax.f32 %v1232_v19, 0.0  ;;  %2419 = vmatprep.mubr.f32.mxu1 %v1644_v49 }
 0x1f2   : > { %2420 = vmatmul.mubr.f32.gmra.mrb[108].mxu1 %v1643_v60  ;;  %v1649_v16 = vsub.f32 %v1425_v50, %v4291_v56 }
 0x1f3   : > { %v1650_v45 = vsub.f32 %v1426_v44, %v4288_v5  ;;  %v1236_v9 = vpop.f32.mrb[112].mxu0 }
 0x1f4   : > { %v1431_v40 = vmax.f32 %v1236_v9, 0.0  ;;  %v1238_v24 = vpop.f32.mrb[113].mxu0 }
 0x1f5   : > { %v1432_v31 = vmax.f32 %v1238_v24, 0.0  ;;  %2424 = vmatprep.mubr.f32.mxu1 %v1650_v45 }
 0x1f6   : > { %2425 = vmatmul.mubr.f32.gmra.mrb[110].mxu1 %v1649_v16  ;;  %v1655_v51 = vsub.f32 %v1431_v40, %v4291_v56 }
 0x1f7   : > { %v1656_v32 = vsub.f32 %v1432_v31, %v4288_v5  ;;  %v1242_v42 = vpop.f32.mrb[114].mxu0 }
 0x1f8   : > { %v1437_v20 = vmax.f32 %v1242_v42, 0.0  ;;  %v1244_v36 = vpop.f32.mrb[115].mxu0 }
 0x1f9   : > { %v1438_v3 = vmax.f32 %v1244_v36, 0.0  ;;  %2429 = vmatprep.mubr.f32.mxu1 %v1656_v32 }
 0x1fa   : > { %2430 = vmatmul.mubr.f32.gmra.mrb[112].mxu1 %v1655_v51  ;;  %v1661_v4 = vsub.f32 %v1437_v20, %v4291_v56 }
 0x1fb   : > { %v1662_v54 = vsub.f32 %v1438_v3, %v4288_v5  ;;  %v1248_v62 = vpop.f32.mrb[116].mxu0 }
 0x1fc   : > { %v1443_v39 = vmax.f32 %v1248_v62, 0.0  ;;  %v1250_v52 = vpop.f32.mrb[117].mxu0 }
 0x1fd   : > { %v1444_v26 = vmax.f32 %v1250_v52, 0.0  ;;  %2434 = vmatprep.mubr.f32.mxu1 %v1662_v54 }
 0x1fe   : > { %2435 = vmatmul.mubr.f32.gmra.mrb[114].mxu1 %v1661_v4  ;;  %v1667_v38 = vsub.f32 %v1443_v39, %v4291_v56 }
 0x1ff   : > { %v1668_v25 = vsub.f32 %v1444_v26, %v4288_v5  ;;  %v1254_v29 = vpop.f32.mrb[118].mxu0 }
 0x200   : > { %v1449_v41 = vmax.f32 %v1254_v29, 0.0  ;;  %v1256_v18 = vpop.f32.mrb[119].mxu0 }
 0x201   : > { %v1450_v17 = vmax.f32 %v1256_v18, 0.0  ;;  %2439 = vmatprep.mubr.f32.mxu1 %v1668_v25 }
 0x202   : > { %2440 = vmatmul.mubr.f32.gmra.mrb[116].mxu1 %v1667_v38  ;;  %v1673_v8 = vsub.f32 %v1449_v41, %v4291_v56 }
 0x203   : > { %v1674_v53 = vsub.f32 %v1450_v17, %v4288_v5  ;;  %v1260_v37 = vpop.f32.mrb[120].mxu0 }
 0x204   : > { %v1455_v6 = vmax.f32 %v1260_v37, 0.0  ;;  %v1262_v10 = vpop.f32.mrb[121].mxu0 }
 0x205   : > { %v1456_v22 = vmax.f32 %v1262_v10, 0.0  ;;  %2444 = vmatprep.mubr.f32.mxu1 %v1674_v53 }
 0x206   : > { %2445 = vmatmul.mubr.f32.gmra.mrb[118].mxu1 %v1673_v8  ;;  %v1679_v1 = vsub.f32 %v1455_v6, %v4291_v56 }
 0x207   : > { %v1680_v58 = vsub.f32 %v1456_v22, %v4288_v5  ;;  %v1266_v46 = vpop.f32.mrb[122].mxu0 }
 0x208   : > { %v1461_v33 = vmax.f32 %v1266_v46, 0.0  ;;  %v1268_v48 = vpop.f32.mrb[123].mxu0 }
 0x209   : > { %v1462_v43 = vmax.f32 %v1268_v48, 0.0  ;;  %2449 = vmatprep.mubr.f32.mxu1 %v1680_v58 }
 0x20a   : > { %2450 = vmatmul.mubr.f32.gmra.mrb[120].mxu1 %v1679_v1  ;;  %v1685_v11 = vsub.f32 %v1461_v33, %v4291_v56 }
 0x20b   : > { %v1686_v2 = vsub.f32 %v1462_v43, %v4288_v5  ;;  %v1272_v28 = vpop.f32.mrb[124].mxu0 }
 0x20c   : > { %v1467_v59 = vmax.f32 %v1272_v28, 0.0  ;;  %v1274_v12 = vpop.f32.mrb[125].mxu0 }
 0x20d   : > { %v1468_v35 = vmax.f32 %v1274_v12, 0.0  ;;  %2454 = vmatprep.mubr.f32.mxu1 %v1686_v2  ;;  %v4441_v2 = vld [vmem:[%s4716_s5] ss:$0 sm:$0xff] }
 0x20e   : > { %2455 = vmatmul.mubr.f32.gmra.mrb[122].mxu1 %v1685_v11  ;;  %v1691_v63 = vsub.f32 %v1467_v59, %v4291_v56 }
 0x20f   : > { %v1692_v30 = vsub.f32 %v1468_v35, %v4288_v5  ;;  %v1278_v55 = vpop.f32.mrb[126].mxu0 }
 0x210   : > { %v1473_v15 = vmax.f32 %v1278_v55, 0.0  ;;  %v1280_v61 = vpop.f32.mrb[127].mxu0 }
 0x211   : > { %v1474_v34 = vmax.f32 %v1280_v61, 0.0  ;;  %2459 = vmatprep.mubr.f32.mxu1 %v1692_v30 }
 0x212   : > { %2460 = vmatmul.mubr.f32.gmra.mrb[124].mxu1 %v1691_v63  ;;  %v1697_v57 = vsub.f32 %v1473_v15, %v4291_v56 }
 0x213   : > { %v1698_v47 = vsub.f32 %v1474_v34, %v4288_v5  ;;  %v1861_v13 = vpop.f32.mrb[128].mxu0 }
 0x214   : > { %v1863_v14 = vpop.f32.mrb[129].mxu0 }
 0x215   : > { %2464 = vmatprep.mubr.f32.mxu1 %v1698_v47 }
 0x216   : > { %2465 = vmatmul.mubr.f32.gmra.mrb[126].mxu1 %v1697_v57 }
 0x217   : > { %v1866_v21 = vpop.f32.mrb[130].mxu0 }
 0x218   : > { %v1868_v23 = vpop.f32.mrb[131].mxu0 }
 0x21b   : > { %v1871_v27 = vpop.f32.mrb[132].mxu0 }
 0x21c   : > { %v1873_v0 = vpop.f32.mrb[133].mxu0 }
 0x21f   : > { %v4393_v49 = vpop.f32.mrb[134].mxu0 }
 0x220   : > { %v1878_v7 = vpop.f32.mrb[135].mxu0 }
 0x223   : > { %v4395_v60 = vpop.f32.mrb[136].mxu0 }
 0x224   : > { %v1883_v50 = vpop.f32.mrb[137].mxu0 }
 0x227   : > { %v4397_v19 = vpop.f32.mrb[138].mxu0 }
 0x228   : > { %v1888_v44 = vpop.f32.mrb[139].mxu0 }
 0x22b   : > { %v4399_v5 = vpop.f32.mrb[140].mxu0 }
 0x22c   : > { %v1893_v45 = vpop.f32.mrb[141].mxu0 }
 0x22f   : > { %v4401_v56 = vpop.f32.mrb[142].mxu0 }
 0x230   : > { %v1898_v9 = vpop.f32.mrb[143].mxu0 }
 0x233   : > { %v4403_v16 = vpop.f32.mrb[144].mxu0 }
 0x234   : > { %v1903_v40 = vpop.f32.mrb[145].mxu0 }
 0x237   : > { %v4405_v24 = vpop.f32.mrb[146].mxu0 }
 0x238   : > { %v1908_v31 = vpop.f32.mrb[147].mxu0 }
 0x23b   : > { %v4407_v32 = vpop.f32.mrb[148].mxu0 }
 0x23c   : > { %v1913_v42 = vpop.f32.mrb[149].mxu0 }
 0x23f   : > { %v4409_v51 = vpop.f32.mrb[150].mxu0 }
 0x240   : > { %v1918_v20 = vpop.f32.mrb[151].mxu0 }
 0x243   : > { %v4411_v36 = vpop.f32.mrb[152].mxu0 }
 0x244   : > { %v1923_v3 = vpop.f32.mrb[153].mxu0 }
 0x247   : > { %v4413_v54 = vpop.f32.mrb[154].mxu0 }
 0x248   : > { %v1928_v62 = vpop.f32.mrb[155].mxu0 }
 0x24b   : > { %v4415_v4 = vpop.f32.mrb[156].mxu0 }
 0x24c   : > { %v1933_v39 = vpop.f32.mrb[157].mxu0 }
 0x24f   : > { %v4417_v52 = vpop.f32.mrb[158].mxu0 }
 0x250   : > { %v1938_v26 = vpop.f32.mrb[159].mxu0 }
 0x253   : > { %v4419_v25 = vpop.f32.mrb[160].mxu0 }
 0x254   : > { %v1943_v29 = vpop.f32.mrb[161].mxu0 }
 0x257   : > { %v4421_v38 = vpop.f32.mrb[162].mxu0 }
 0x258   : > { %v1948_v41 = vpop.f32.mrb[163].mxu0 }
 0x25b   : > { %v4423_v18 = vpop.f32.mrb[164].mxu0 }
 0x25c   : > { %v1953_v17 = vpop.f32.mrb[165].mxu0 }
 0x25f   : > { %v4425_v53 = vpop.f32.mrb[166].mxu0 }
 0x260   : > { %v1958_v37 = vpop.f32.mrb[167].mxu0 }
 0x263   : > { %v4427_v8 = vpop.f32.mrb[168].mxu0 }
 0x264   : > { %v1963_v6 = vpop.f32.mrb[169].mxu0 }
 0x267   : > { %v4429_v10 = vpop.f32.mrb[170].mxu0 }
 0x268   : > { %v1968_v22 = vpop.f32.mrb[171].mxu0 }
 0x26b   : > { %v4431_v58 = vpop.f32.mrb[172].mxu0 }
 0x26c   : > { %v1973_v46 = vpop.f32.mrb[173].mxu0 }
 0x26d   : > { %v2311_v1 = vpop.f32.mrb[64].mxu1 }
 0x26e   : > { %v3091_v33 = vadd.f32 %v2311_v1, %v1861_v13  ;;  %v2313_v48 = vpop.f32.mrb[65].mxu1 }
 0x26f   : > { %v4436_v43 = vpop.f32.mrb[174].mxu0 }
 0x270   : > { %v2471_v28 = vmax.f32 %v3091_v33, 0.0  ;;  %v1978_v11 = vpop.f32.mrb[175].mxu0 }
 0x271   : > { %v2316_v59 = vpop.f32.mrb[66].mxu1 }
 0x272   : > { %v3092_v12 = vadd.f32 %v2316_v59, %v1866_v21  ;;  %v2318_v35 = vpop.f32.mrb[67].mxu1  ;;  %v2509_v30 = vmul.f32 %v4441_v2, %v2471_v28 }
 0x273   : > { %v4444_v55 = vpop.f32.mrb[176].mxu0 }
 0x274   : > { %v2472_v63 = vmax.f32 %v3092_v12, 0.0  ;;  %2573 = vadd.xlane.f32.xlu0 %v2509_v30  ;;  %2541 = vst [vmem:[%s4446_s21] sm:$0xff] %v2509_v30  ;;  %v1983_v15 = vpop.f32.mrb[177].mxu0 }
 0x275   : > { %v2321_v61 = vpop.f32.mrb[68].mxu1 }
 0x276   : > { %v3093_v34 = vadd.f32 %v2321_v61, %v1871_v27  ;;  %v2323_v47 = vpop.f32.mrb[69].mxu1  ;;  %v2510_v13 = vmul.f32 %v4441_v2, %v2472_v63 }
 0x277   : > { %v4450_v57 = vpop.f32.mrb[178].mxu0 }
 0x278   : > { %v2473_v14 = vmax.f32 %v3093_v34, 0.0  ;;  %2575 = vadd.xlane.f32.xlu0 %v2510_v13  ;;  %2542 = vst [vmem:[%s4446_s21 + $0x8] sm:$0xff] %v2510_v13  ;;  %v1988_v21 = vpop.f32.mrb[179].mxu0 }
 0x279   : > { %v2326_v23 = vpop.f32.mrb[70].mxu1 }
 0x27a   : > { %v3094_v0 = vadd.f32 %v2326_v23, %v4393_v49  ;;  %v2328_v7 = vpop.f32.mrb[71].mxu1  ;;  %v2511_v50 = vmul.f32 %v4441_v2, %v2473_v14 }
 0x27b   : > { %v4455_v44 = vpop.f32.mrb[180].mxu0 }
 0x27c   : > { %v2474_v45 = vmax.f32 %v3094_v0, 0.0  ;;  %2577 = vadd.xlane.f32.xlu1 %v2511_v50  ;;  %2543 = vst [vmem:[%s4446_s21 + $0x10] sm:$0xff] %v2511_v50  ;;  %v1993_v27 = vpop.f32.mrb[181].mxu0 }
 0x27d   : > { %v2331_v9 = vpop.f32.mrb[72].mxu1 }
 0x27e   : > { %v3095_v40 = vadd.f32 %v2331_v9, %v4395_v60  ;;  %v2333_v31 = vpop.f32.mrb[73].mxu1  ;;  %v2512_v42 = vmul.f32 %v4441_v2, %v2474_v45 }
 0x27f   : > { %v4460_v20 = vpop.f32.mrb[182].mxu0 }
 0x280   : > { %v2475_v3 = vmax.f32 %v3095_v40, 0.0  ;;  %2579 = vadd.xlane.f32.xlu1 %v2512_v42  ;;  %2544 = vst [vmem:[%s4446_s21 + $0x18] sm:$0xff] %v2512_v42  ;;  %v1998_v49 = vpop.f32.mrb[183].mxu0 }
 0x281   : > { %v2336_v62 = vpop.f32.mrb[74].mxu1 }
 0x282   : > { %v3096_v39 = vadd.f32 %v2336_v62, %v4397_v19  ;;  %v2338_v26 = vpop.f32.mrb[75].mxu1  ;;  %v2513_v29 = vmul.f32 %v4441_v2, %v2475_v3 }
 0x283   : > { %v4465_v41 = vpop.f32.mrb[184].mxu0 }
 0x284   : > { %v2476_v17 = vmax.f32 %v3096_v39, 0.0  ;;  %2581 = vadd.xlane.f32.xlu0 %v2513_v29  ;;  %2545 = vst [vmem:[%s4446_s21 + $0x20] sm:$0xff] %v2513_v29  ;;  %v2003_v60 = vpop.f32.mrb[185].mxu0 }
 0x285   : > { %v2341_v37 = vpop.f32.mrb[76].mxu1 }
 0x286   : > { %v3097_v6 = vadd.f32 %v2341_v37, %v4399_v5  ;;  %v2343_v22 = vpop.f32.mrb[77].mxu1  ;;  %v2514_v46 = vmul.f32 %v4441_v2, %v2476_v17 }
 0x287   : > { %v4470_v1 = vpop.f32.mrb[186].mxu0 }
 0x288   : > { %v2477_v33 = vmax.f32 %v3097_v6, 0.0  ;;  %2583 = vadd.xlane.f32.xlu1 %v2514_v46  ;;  %2546 = vst [vmem:[%s4446_s21 + $0x28] sm:$0xff] %v2514_v46  ;;  %v2008_v19 = vpop.f32.mrb[187].mxu0 }
 0x289   : > { %v2346_v48 = vpop.f32.mrb[78].mxu1 }
 0x28a   : > { %v3098_v28 = vadd.f32 %v2346_v48, %v4401_v56  ;;  %v2348_v11 = vpop.f32.mrb[79].mxu1  ;;  %v2515_v59 = vmul.f32 %v4441_v2, %v2477_v33 }
 0x28b   : > { %v4475_v12 = vpop.f32.mrb[188].mxu0 }
 0x28c   : > { %v2478_v35 = vmax.f32 %v3098_v28, 0.0  ;;  %2585 = vadd.xlane.f32.xlu0 %v2515_v59  ;;  %2547 = vst [vmem:[%s4446_s21 + $0x30] sm:$0xff] %v2515_v59  ;;  %v2013_v5 = vpop.f32.mrb[189].mxu0 }
 0x28d   : > { %v2351_v30 = vpop.f32.mrb[80].mxu1 }
 0x28e   : > { %v3099_v63 = vadd.f32 %v2351_v30, %v4403_v16  ;;  %v2353_v15 = vpop.f32.mrb[81].mxu1  ;;  %v2516_v61 = vmul.f32 %v4441_v2, %v2478_v35 }
 0x28f   : > { %v4480_v34 = vpop.f32.mrb[190].mxu0 }
 0x290   : > { %v2479_v47 = vmax.f32 %v3099_v63, 0.0  ;;  %2587 = vadd.xlane.f32.xlu1 %v2516_v61  ;;  %2548 = vst [vmem:[%s4446_s21 + $0x38] sm:$0xff] %v2516_v61  ;;  %v2018_v56 = vpop.f32.mrb[191].mxu0 }
 0x291   : > { %v2356_v13 = vpop.f32.mrb[82].mxu1 }
 0x292   : > { %v3100_v14 = vadd.f32 %v2356_v13, %v4405_v24  ;;  %v2358_v21 = vpop.f32.mrb[83].mxu1  ;;  %v2517_v23 = vmul.f32 %v4441_v2, %v2479_v47 }
 0x294   : > { %v2480_v0 = vmax.f32 %v3100_v14, 0.0  ;;  %2589 = vadd.xlane.f32.xlu0 %v2517_v23  ;;  %2549 = vst [vmem:[%s4446_s21 + $0x40] sm:$0xff] %v2517_v23 }
 0x295   : > { %v2361_v16 = vpop.f32.mrb[84].mxu1 }
 0x296   : > { %v3101_v7 = vadd.f32 %v2361_v16, %v4407_v32  ;;  %v2363_v50 = vpop.f32.mrb[85].mxu1  ;;  %v2518_v45 = vmul.f32 %v4441_v2, %v2480_v0 }
 0x298   : > { %v2481_v27 = vmax.f32 %v3101_v7, 0.0  ;;  %2591 = vadd.xlane.f32.xlu1 %v2518_v45  ;;  %2550 = vst [vmem:[%s4446_s21 + $0x48] sm:$0xff] %v2518_v45 }
 0x299   : > { %v2366_v9 = vpop.f32.mrb[86].mxu1 }
 0x29a   : > { %v3102_v24 = vadd.f32 %v2366_v9, %v4409_v51  ;;  %v2368_v40 = vpop.f32.mrb[87].mxu1  ;;  %v2519_v31 = vmul.f32 %v4441_v2, %v2481_v27 }
 0x29c   : > { %v2482_v42 = vmax.f32 %v3102_v24, 0.0  ;;  %2593 = vadd.xlane.f32.xlu0 %v2519_v31  ;;  %2551 = vst [vmem:[%s4446_s21 + $0x50] sm:$0xff] %v2519_v31 }
 0x29d   : > { %v2371_v3 = vpop.f32.mrb[88].mxu1 }
 0x29e   : > { %v3103_v32 = vadd.f32 %v2371_v3, %v4411_v36  ;;  %v2373_v49 = vpop.f32.mrb[89].mxu1  ;;  %v2520_v62 = vmul.f32 %v4441_v2, %v2482_v42 }
 0x2a0   : > { %v2483_v39 = vmax.f32 %v3103_v32, 0.0  ;;  %2595 = vadd.xlane.f32.xlu1 %v2520_v62  ;;  %2552 = vst [vmem:[%s4446_s21 + $0x58] sm:$0xff] %v2520_v62 }
 0x2a1   : > { %v2376_v26 = vpop.f32.mrb[90].mxu1 }
 0x2a2   : > { %v3104_v51 = vadd.f32 %v2376_v26, %v4413_v54  ;;  %v2378_v29 = vpop.f32.mrb[91].mxu1  ;;  %v2521_v17 = vmul.f32 %v4441_v2, %v2483_v39 }
 0x2a4   : > { %v2484_v60 = vmax.f32 %v3104_v51, 0.0  ;;  %2597 = vadd.xlane.f32.xlu0 %v2521_v17  ;;  %2553 = vst [vmem:[%s4446_s21 + $0x60] sm:$0xff] %v2521_v17 }
 0x2a5   : > { %v2381_v37 = vpop.f32.mrb[92].mxu1 }
 0x2a6   : > { %v3105_v36 = vadd.f32 %v2381_v37, %v4415_v4  ;;  %v2383_v6 = vpop.f32.mrb[93].mxu1  ;;  %v2522_v22 = vmul.f32 %v4441_v2, %v2484_v60 }
 0x2a8   : > { %v2485_v46 = vmax.f32 %v3105_v36, 0.0  ;;  %2599 = vadd.xlane.f32.xlu1 %v2522_v22  ;;  %2554 = vst [vmem:[%s4446_s21 + $0x68] sm:$0xff] %v2522_v22 }
 0x2a9   : > { %v2386_v33 = vpop.f32.mrb[94].mxu1 }
 0x2aa   : > { %v3106_v54 = vadd.f32 %v2386_v33, %v4417_v52  ;;  %v2388_v19 = vpop.f32.mrb[95].mxu1  ;;  %v2523_v48 = vmul.f32 %v4441_v2, %v2485_v46 }
 0x2ac   : > { %v2486_v28 = vmax.f32 %v3106_v54, 0.0  ;;  %2601 = vadd.xlane.f32.xlu0 %v2523_v48  ;;  %2555 = vst [vmem:[%s4446_s21 + $0x70] sm:$0xff] %v2523_v48 }
 0x2ad   : > { %v2391_v11 = vpop.f32.mrb[96].mxu1 }
 0x2ae   : > { %v3107_v4 = vadd.f32 %v2391_v11, %v4419_v25  ;;  %v2393_v59 = vpop.f32.mrb[97].mxu1  ;;  %v2524_v35 = vmul.f32 %v4441_v2, %v2486_v28 }
 0x2b0   : > { %v2487_v5 = vmax.f32 %v3107_v4, 0.0  ;;  %2603 = vadd.xlane.f32.xlu1 %v2524_v35  ;;  %2556 = vst [vmem:[%s4446_s21 + $0x78] sm:$0xff] %v2524_v35 }
 0x2b1   : > { %v2396_v30 = vpop.f32.mrb[98].mxu1 }
 0x2b2   : > { %v3108_v52 = vadd.f32 %v2396_v30, %v4421_v38  ;;  %v2398_v63 = vpop.f32.mrb[99].mxu1  ;;  %v2525_v15 = vmul.f32 %v4441_v2, %v2487_v5 }
 0x2b4   : > { %v2488_v61 = vmax.f32 %v3108_v52, 0.0  ;;  %2605 = vadd.xlane.f32.xlu0 %v2525_v15  ;;  %2557 = vst [vmem:[%s4446_s21 + $0x80] sm:$0xff] %v2525_v15 }
 0x2b5   : > { %v2401_v47 = vpop.f32.mrb[100].mxu1 }
 0x2b6   : > { %v3109_v25 = vadd.f32 %v2401_v47, %v4423_v18  ;;  %v2403_v56 = vpop.f32.mrb[101].mxu1  ;;  %v2526_v13 = vmul.f32 %v4441_v2, %v2488_v61 }
 0x2b8   : > { %v2489_v14 = vmax.f32 %v3109_v25, 0.0  ;;  %2607 = vadd.xlane.f32.xlu1 %v2526_v13  ;;  %2558 = vst [vmem:[%s4446_s21 + $0x88] sm:$0xff] %v2526_v13 }
 0x2b9   : > { %v2406_v21 = vpop.f32.mrb[102].mxu1 }
 0x2ba   : > { %v3110_v38 = vadd.f32 %v2406_v21, %v4425_v53  ;;  %v2408_v23 = vpop.f32.mrb[103].mxu1  ;;  %v2527_v0 = vmul.f32 %v4441_v2, %v2489_v14 }
 0x2bc   : > { %v2490_v16 = vmax.f32 %v3110_v38, 0.0  ;;  %2609 = vadd.xlane.f32.xlu0 %v2527_v0  ;;  %2559 = vst [vmem:[%s4446_s21 + $0x90] sm:$0xff] %v2527_v0 }
 0x2bd   : > { %v2411_v7 = vpop.f32.mrb[104].mxu1 }
 0x2be   : > { %v3111_v18 = vadd.f32 %v2411_v7, %v4427_v8  ;;  %v2413_v50 = vpop.f32.mrb[105].mxu1  ;;  %v2528_v45 = vmul.f32 %v4441_v2, %v2490_v16  ;;  %v4556_v16 = vld [vmem:[#allocation2] ss:$0 sm:$0xff] }
 0x2c0   : > { %v2491_v27 = vmax.f32 %v3111_v18, 0.0  ;;  %2611 = vadd.xlane.f32.xlu1 %v2528_v45  ;;  %2560 = vst [vmem:[%s4446_s21 + $0x98] sm:$0xff] %v2528_v45 }
 0x2c1   : > { %v2416_v9 = vpop.f32.mrb[106].mxu1 }
 0x2c2   : > { %v3112_v53 = vadd.f32 %v2416_v9, %v4429_v10  ;;  %v2418_v24 = vpop.f32.mrb[107].mxu1  ;;  %v2529_v40 = vmul.f32 %v4441_v2, %v2491_v27 }
 0x2c4   : > { %v2492_v31 = vmax.f32 %v3112_v53, 0.0  ;;  %2613 = vadd.xlane.f32.xlu0 %v2529_v40  ;;  %2561 = vst [vmem:[%s4446_s21 + $0xa0] sm:$0xff] %v2529_v40 }
 0x2c5   : > { %v2421_v42 = vpop.f32.mrb[108].mxu1 }
 0x2c6   : > { %v3113_v8 = vadd.f32 %v2421_v42, %v4431_v58  ;;  %v2423_v3 = vpop.f32.mrb[109].mxu1  ;;  %v2530_v32 = vmul.f32 %v4441_v2, %v2492_v31 }
 0x2c8   : > { %v2493_v49 = vmax.f32 %v3113_v8, 0.0  ;;  %2615 = vadd.xlane.f32.xlu1 %v2530_v32  ;;  %2562 = vst [vmem:[%s4446_s21 + $0xa8] sm:$0xff] %v2530_v32 }
 0x2c9   : > { %v2426_v62 = vpop.f32.mrb[110].mxu1 }
 0x2ca   : > { %v3114_v10 = vadd.f32 %v2426_v62, %v4436_v43  ;;  %v2428_v39 = vpop.f32.mrb[111].mxu1  ;;  %v2531_v26 = vmul.f32 %v4441_v2, %v2493_v49 }
 0x2cc   : > { %v2494_v51 = vmax.f32 %v3114_v10, 0.0  ;;  %2617 = vadd.xlane.f32.xlu0 %v2531_v26  ;;  %2563 = vst [vmem:[%s4446_s21 + $0xb0] sm:$0xff] %v2531_v26 }
 0x2cd   : > { %v2431_v29 = vpop.f32.mrb[112].mxu1 }
 0x2ce   : > { %v3115_v58 = vadd.f32 %v2431_v29, %v4444_v55  ;;  %v2433_v17 = vpop.f32.mrb[113].mxu1  ;;  %v2532_v60 = vmul.f32 %v4441_v2, %v2494_v51 }
 0x2d0   : > { %v2495_v37 = vmax.f32 %v3115_v58, 0.0  ;;  %2619 = vadd.xlane.f32.xlu1 %v2532_v60  ;;  %2564 = vst [vmem:[%s4446_s21 + $0xb8] sm:$0xff] %v2532_v60 }
 0x2d1   : > { %v2436_v36 = vpop.f32.mrb[114].mxu1 }
 0x2d2   : > { %v3116_v43 = vadd.f32 %v2436_v36, %v4450_v57  ;;  %v2438_v6 = vpop.f32.mrb[115].mxu1  ;;  %v2533_v22 = vmul.f32 %v4441_v2, %v2495_v37 }
 0x2d4   : > { %v2496_v46 = vmax.f32 %v3116_v43, 0.0  ;;  %2621 = vadd.xlane.f32.xlu0 %v2533_v22  ;;  %2565 = vst [vmem:[%s4446_s21 + $0xc0] sm:$0xff] %v2533_v22 }
 0x2d5   : > { %v2441_v33 = vpop.f32.mrb[116].mxu1 }
 0x2d6   : > { %v3117_v55 = vadd.f32 %v2441_v33, %v4455_v44  ;;  %v2443_v54 = vpop.f32.mrb[117].mxu1  ;;  %v2534_v19 = vmul.f32 %v4441_v2, %v2496_v46 }
 0x2d8   : > { %v2497_v48 = vmax.f32 %v3117_v55, 0.0  ;;  %2623 = vadd.xlane.f32.xlu1 %v2534_v19  ;;  %2566 = vst [vmem:[%s4446_s21 + $0xc8] sm:$0xff] %v2534_v19 }
 0x2d9   : > { %v2446_v28 = vpop.f32.mrb[118].mxu1 }
 0x2da   : > { %v3118_v57 = vadd.f32 %v2446_v28, %v4460_v20  ;;  %v2448_v11 = vpop.f32.mrb[119].mxu1  ;;  %v2535_v4 = vmul.f32 %v4441_v2, %v2497_v48 }
 0x2dc   : > { %v2498_v59 = vmax.f32 %v3118_v57, 0.0  ;;  %2625 = vadd.xlane.f32.xlu0 %v2535_v4  ;;  %2567 = vst [vmem:[%s4446_s21 + $0xd0] sm:$0xff] %v2535_v4 }
 0x2dd   : > { %v2451_v35 = vpop.f32.mrb[120].mxu1 }
 0x2de   : > { %v3119_v44 = vadd.f32 %v2451_v35, %v4465_v41  ;;  %v2453_v5 = vpop.f32.mrb[121].mxu1  ;;  %v2536_v30 = vmul.f32 %v4441_v2, %v2498_v59 }
 0x2e0   : > { %v2499_v52 = vmax.f32 %v3119_v44, 0.0  ;;  %2627 = vadd.xlane.f32.xlu1 %v2536_v30  ;;  %2568 = vst [vmem:[%s4446_s21 + $0xd8] sm:$0xff] %v2536_v30 }
 0x2e1   : > { %v2456_v63 = vpop.f32.mrb[122].mxu1 }
 0x2e2   : > { %v3120_v20 = vadd.f32 %v2456_v63, %v4470_v1  ;;  %v2458_v15 = vpop.f32.mrb[123].mxu1  ;;  %v2537_v61 = vmul.f32 %v4441_v2, %v2499_v52 }
 0x2e4   : > { %v2500_v47 = vmax.f32 %v3120_v20, 0.0  ;;  %2629 = vadd.xlane.f32.xlu0 %v2537_v61  ;;  %2569 = vst [vmem:[%s4446_s21 + $0xe0] sm:$0xff] %v2537_v61 }
 0x2e5   : > { %v2461_v25 = vpop.f32.mrb[124].mxu1 }
 0x2e6   : > { %v3121_v41 = vadd.f32 %v2461_v25, %v4475_v12  ;;  %v2463_v56 = vpop.f32.mrb[125].mxu1  ;;  %v2538_v13 = vmul.f32 %v4441_v2, %v2500_v47 }
 0x2e8   : > { %v2501_v14 = vmax.f32 %v3121_v41, 0.0  ;;  %2631 = vadd.xlane.f32.xlu1 %v2538_v13  ;;  %2570 = vst [vmem:[%s4446_s21 + $0xe8] sm:$0xff] %v2538_v13 }
 0x2e9   : > { %v2466_v1 = vpop.f32.mrb[126].mxu1 }
 0x2ea   : > { %v3122_v21 = vadd.f32 %v2466_v1, %v4480_v34  ;;  %v2468_v38 = vpop.f32.mrb[127].mxu1  ;;  %v2539_v23 = vmul.f32 %v4441_v2, %v2501_v14 }
 0x2ec   : > { %v2502_v0 = vmax.f32 %v3122_v21, 0.0  ;;  %2633 = vadd.xlane.f32.xlu0 %v2539_v23  ;;  %2571 = vst [vmem:[%s4446_s21 + $0xf0] sm:$0xff] %v2539_v23 }
 0x2ee   : > { %v2540_v12 = vmul.f32 %v4441_v2, %v2502_v0 }
 0x2f0   : > { %2635 = vadd.xlane.f32.xlu1 %v2540_v12  ;;  %2572 = vst [vmem:[%s4446_s21 + $0xf8] sm:$0xff] %v2540_v12  ;;  %s3278_s21 = scalar_lea.vmem %s3277_s20, 8192 }
 0x2f1   : > { %p3280_p3 = scmp.lt.s32.totalorder %s3278_s21, %s3272_s22 }
 0x2f3   : > { %p3281_p4 = por %p3280_p3, %p3279_p2 }
 0x2f5   : > { %p3282_p7 = pnand %p3281_p4, %p3275_p12 }
 0x301   : > { %v2574_v2 = vpop.xlane.xlu0 %2573 }
 0x302   : > { %v2644_v34 = vadd.f32 %v4556_v16, %v2574_v2 }
 0x303   : > { %3285 = shalt.err (!%p3282_p7)
}
 0x304   : > { %s3286_s18 = scalar_lea.hbm %s4561_s28, 4096  ;;  %s3290_s27 = scalar_lea.hbm %s4718_s7, 8192 }
 0x305   : > { %p3287_p8 = scmp.ne.s32.totalorder %s4561_s28, %s3286_s18  ;;  %p3291_p1 = scmp.lt.u32.totalorder %s4561_s28, %s4718_s7 }
 0x306   : > { %p3292_p0 = scmp.lt.u32.totalorder %s3290_s27, %s3286_s18  ;;  %p3294_p6 = scmp.lt.u32.totalorder %s3286_s18, %s4561_s28 }
 0x307   : > { %p3288_p11 = pnand %p3287_p8, %p4730_p9 }
 0x308   : > { %p3293_p5 = por %p3292_p0, %p3291_p1 }
 0x309   : > { %p3289_p13 = pneg %p3288_p11 }
 0x30a   : > { %p3295_p10 = por %p3294_p6, %p3293_p5 }
 0x30c   : > { %p3296_p12 = pnand %p3295_p10, %p3289_p13 }
 0x30e   : > { %3299 = shalt.err (!%p3296_p12)
}
 0x30f   : > { %s3346_s13 = smov 128   ;;  %s3347_s22 = smov 8   ;;  %2677 = vst.msk [vmem:[%s4570_s19] sm:$0xff] %vm2676_vm1, %v2644_v34  ;;  %v2576_v7 = vpop.xlane.xlu0 %2575  ;;  %v2578_v50 = vpop.xlane.xlu1 %2577 }
 0x310   : > { %3191 = dma.vmem_to_hbm [thread:$0]  (%p4730_p9), %s4563_s26, 4096, %s4561_s28, %s4575_s6, %s3346_s13, %s3346_s13, %s3347_s22   ;;  %v2645_v18 = vadd.f32 %v4556_v16, %v2576_v7  ;;  %v2646_v45 = vadd.f32 %v4556_v16, %v2578_v50 }
 0x312   : > { %2678 = vst.msk [vmem:[%s4570_s19 + $0x8] sm:$0xff] %vm2676_vm1, %v2645_v18  ;;  %2679 = vst.msk [vmem:[%s4570_s19 + $0x10] sm:$0xff] %vm2676_vm1, %v2646_v45 }
 0x313   : > { %v2580_v27 = vpop.xlane.xlu1 %2579  ;;  %v2582_v53 = vpop.xlane.xlu0 %2581 }
 0x314   : > { %v2647_v9 = vadd.f32 %v4556_v16, %v2580_v27  ;;  %v2648_v24 = vadd.f32 %v4556_v16, %v2582_v53 }
 0x316   : > { %2680 = vst.msk [vmem:[%s4570_s19 + $0x18] sm:$0xff] %vm2676_vm1, %v2647_v9  ;;  %2681 = vst.msk [vmem:[%s4570_s19 + $0x20] sm:$0xff] %vm2676_vm1, %v2648_v24 }
 0x317   : > { %v2584_v40 = vpop.xlane.xlu1 %2583 }
 0x318   : > { %v2649_v31 = vadd.f32 %v4556_v16, %v2584_v40 }
 0x319   : > { %v2586_v42 = vpop.xlane.xlu0 %2585 }
 0x31a   : > { %2682 = vst.msk [vmem:[%s4570_s19 + $0x28] sm:$0xff] %vm2676_vm1, %v2649_v31  ;;  %v2650_v8 = vadd.f32 %v4556_v16, %v2586_v42 }
 0x31c   : > { %2683 = vst.msk [vmem:[%s4570_s19 + $0x30] sm:$0xff] %vm2676_vm1, %v2650_v8 }
 0x31d   : > { %v2588_v3 = vpop.xlane.xlu1 %2587 }
 0x31e   : > { %v2651_v32 = vadd.f32 %v4556_v16, %v2588_v3 }
 0x320   : > { %2684 = vst.msk [vmem:[%s4570_s19 + $0x38] sm:$0xff] %vm2676_vm1, %v2651_v32 }
 0x321   : > { %v2590_v49 = vpop.xlane.xlu0 %2589 }
 0x322   : > { %v2652_v62 = vadd.f32 %v4556_v16, %v2590_v49 }
 0x324   : > { %2685 = vst.msk [vmem:[%s4570_s19 + $0x40] sm:$0xff] %vm2676_vm1, %v2652_v62 }
 0x325   : > { %v2592_v10 = vpop.xlane.xlu1 %2591 }
 0x326   : > { %v2653_v39 = vadd.f32 %v4556_v16, %v2592_v10 }
 0x328   : > { %2686 = vst.msk [vmem:[%s4570_s19 + $0x48] sm:$0xff] %vm2676_vm1, %v2653_v39 }
 0x329   : > { %v2594_v26 = vpop.xlane.xlu0 %2593 }
 0x32a   : > { %v2654_v51 = vadd.f32 %v4556_v16, %v2594_v26 }
 0x32c   : > { %2687 = vst.msk [vmem:[%s4570_s19 + $0x50] sm:$0xff] %vm2676_vm1, %v2654_v51 }
 0x32d   : > { %v2596_v29 = vpop.xlane.xlu1 %2595 }
 0x32e   : > { %v2655_v58 = vadd.f32 %v4556_v16, %v2596_v29 }
 0x330   : > { %2688 = vst.msk [vmem:[%s4570_s19 + $0x58] sm:$0xff] %vm2676_vm1, %v2655_v58 }
 0x331   : > { %v2598_v17 = vpop.xlane.xlu0 %2597 }
 0x332   : > { %v2656_v60 = vadd.f32 %v4556_v16, %v2598_v17 }
 0x334   : > { %2689 = vst.msk [vmem:[%s4570_s19 + $0x60] sm:$0xff] %vm2676_vm1, %v2656_v60 }
 0x335   : > { %v2600_v37 = vpop.xlane.xlu1 %2599 }
 0x336   : > { %v2657_v36 = vadd.f32 %v4556_v16, %v2600_v37 }
 0x338   : > { %2690 = vst.msk [vmem:[%s4570_s19 + $0x68] sm:$0xff] %vm2676_vm1, %v2657_v36 }
 0x339   : > { %v2602_v43 = vpop.xlane.xlu0 %2601 }
 0x33a   : > { %v2658_v6 = vadd.f32 %v4556_v16, %v2602_v43 }
 0x33c   : > { %2691 = vst.msk [vmem:[%s4570_s19 + $0x70] sm:$0xff] %vm2676_vm1, %v2658_v6 }
 0x33d   : > { %v2604_v22 = vpop.xlane.xlu1 %2603 }
 0x33e   : > { %v2659_v46 = vadd.f32 %v4556_v16, %v2604_v22 }
 0x340   : > { %2692 = vst.msk [vmem:[%s4570_s19 + $0x78] sm:$0xff] %vm2676_vm1, %v2659_v46 }
 0x341   : > { %v2606_v33 = vpop.xlane.xlu0 %2605 }
 0x342   : > { %v2660_v55 = vadd.f32 %v4556_v16, %v2606_v33 }
 0x344   : > { %2693 = vst.msk [vmem:[%s4570_s19 + $0x80] sm:$0xff] %vm2676_vm1, %v2660_v55 }
 0x345   : > { %v2608_v54 = vpop.xlane.xlu1 %2607 }
 0x346   : > { %v2661_v19 = vadd.f32 %v4556_v16, %v2608_v54 }
 0x348   : > { %2694 = vst.msk [vmem:[%s4570_s19 + $0x88] sm:$0xff] %vm2676_vm1, %v2661_v19 }
 0x349   : > { %v2610_v48 = vpop.xlane.xlu0 %2609 }
 0x34a   : > { %v2662_v28 = vadd.f32 %v4556_v16, %v2610_v48 }
 0x34c   : > { %2695 = vst.msk [vmem:[%s4570_s19 + $0x90] sm:$0xff] %vm2676_vm1, %v2662_v28 }
 0x34d   : > { %v2612_v57 = vpop.xlane.xlu1 %2611 }
 0x34e   : > { %v2663_v11 = vadd.f32 %v4556_v16, %v2612_v57 }
 0x350   : > { %2696 = vst.msk [vmem:[%s4570_s19 + $0x98] sm:$0xff] %vm2676_vm1, %v2663_v11 }
 0x351   : > { %v2614_v4 = vpop.xlane.xlu0 %2613 }
 0x352   : > { %v2664_v59 = vadd.f32 %v4556_v16, %v2614_v4 }
 0x354   : > { %2697 = vst.msk [vmem:[%s4570_s19 + $0xa0] sm:$0xff] %vm2676_vm1, %v2664_v59 }
 0x355   : > { %v2616_v35 = vpop.xlane.xlu1 %2615 }
 0x356   : > { %v2665_v44 = vadd.f32 %v4556_v16, %v2616_v35 }
 0x358   : > { %2698 = vst.msk [vmem:[%s4570_s19 + $0xa8] sm:$0xff] %vm2676_vm1, %v2665_v44 }
 0x359   : > { %v2618_v5 = vpop.xlane.xlu0 %2617 }
 0x35a   : > { %v2666_v30 = vadd.f32 %v4556_v16, %v2618_v5 }
 0x35c   : > { %2699 = vst.msk [vmem:[%s4570_s19 + $0xb0] sm:$0xff] %vm2676_vm1, %v2666_v30 }
 0x35d   : > { %v2620_v52 = vpop.xlane.xlu1 %2619 }
 0x35e   : > { %v2667_v63 = vadd.f32 %v4556_v16, %v2620_v52 }
 0x360   : > { %2700 = vst.msk [vmem:[%s4570_s19 + $0xb8] sm:$0xff] %vm2676_vm1, %v2667_v63 }
 0x361   : > { %v2622_v20 = vpop.xlane.xlu0 %2621 }
 0x362   : > { %v2668_v15 = vadd.f32 %v4556_v16, %v2622_v20 }
 0x364   : > { %2701 = vst.msk [vmem:[%s4570_s19 + $0xc0] sm:$0xff] %vm2676_vm1, %v2668_v15 }
 0x365   : > { %v2624_v61 = vpop.xlane.xlu1 %2623 }
 0x366   : > { %v2669_v47 = vadd.f32 %v4556_v16, %v2624_v61 }
 0x368   : > { %2702 = vst.msk [vmem:[%s4570_s19 + $0xc8] sm:$0xff] %vm2676_vm1, %v2669_v47 }
 0x369   : > { %v2626_v25 = vpop.xlane.xlu0 %2625 }
 0x36a   : > { %v2670_v41 = vadd.f32 %v4556_v16, %v2626_v25 }
 0x36c   : > { %2703 = vst.msk [vmem:[%s4570_s19 + $0xd0] sm:$0xff] %vm2676_vm1, %v2670_v41 }
 0x36d   : > { %v2628_v56 = vpop.xlane.xlu1 %2627 }
 0x36e   : > { %v2671_v13 = vadd.f32 %v4556_v16, %v2628_v56 }
 0x370   : > { %2704 = vst.msk [vmem:[%s4570_s19 + $0xd8] sm:$0xff] %vm2676_vm1, %v2671_v13 }
 0x371   : > { %v2630_v14 = vpop.xlane.xlu0 %2629 }
 0x372   : > { %v2672_v1 = vadd.f32 %v4556_v16, %v2630_v14 }
 0x374   : > { %2705 = vst.msk [vmem:[%s4570_s19 + $0xe0] sm:$0xff] %vm2676_vm1, %v2672_v1 }
 0x375   : > { %v2632_v21 = vpop.xlane.xlu1 %2631 }
 0x376   : > { %v2673_v38 = vadd.f32 %v4556_v16, %v2632_v21 }
 0x378   : > { %2706 = vst.msk [vmem:[%s4570_s19 + $0xe8] sm:$0xff] %vm2676_vm1, %v2673_v38 }
 0x379   : > { %v2634_v23 = vpop.xlane.xlu0 %2633 }
 0x37a   : > { %v2674_v0 = vadd.f32 %v4556_v16, %v2634_v23 }
 0x37c   : > { %2707 = vst.msk [vmem:[%s4570_s19 + $0xf0] sm:$0xff] %vm2676_vm1, %v2674_v0 }
 0x37d   : > { %v2636_v12 = vpop.xlane.xlu1 %2635 }
 0x37e   : > { %v2675_v2 = vadd.f32 %v4556_v16, %v2636_v12 }
 0x380   : > { %2708 = vst.msk [vmem:[%s4570_s19 + $0xf8] sm:$0xff] %vm2676_vm1, %v2675_v2 }
 0x381 PF: > { %p3203_p9 = scmp.ge.s32.totalorder %s3338_s10, 2  ;;  %s2747_s16 = sand.u32 1, %s3326_s29  }
 0x382   : > { %p4731_p2 = scmp.ne.s32.totalorder %s4724_s17, 0  ;;  %s2748_s26 = scalar_lea.sflag [#allocation5], %s2747_s16 }
 0x384   : > { %p3198_p3 = pnand %p3203_p9, %p4731_p2 }
 0x386   : > { %3321 = dma.done.wait (!%p3198_p3), %s2748_s26, 4096  }
 0x387   : > { %3323 = vsyncadd (!%p3198_p3), %s2748_s26, 4294963200  ;;  %p22_p4 = scmp.ge.s32.totalorder %s3421_s12, 4   ;;  %s4732_s29 = smov %s3330_s30 }
 0x388   : > { %s4733_s30 = smov %s3334_s9  ;;  %s4734_s9 = smov %s3432_s15 }
 0x389   : > { %s4735_s10 = smov %s3421_s12  ;;  %24 = sbr.rel (!%p22_p4) target bundleno = 7 (0x7), region = 100 }
 0x390   :  { %2761 = vsyncpa [#allocation4], 1 }
 0x391   :  { %2763 = vsyncpa [#allocation4 + $0x1], 1 }
 0x392   :  { %2764 = vsyncpa [#allocation5], 1 }
 0x393   :  { %2766 = vsyncpa [#allocation5 + $0x1], 1 }

</bundles_post_ra>
